<compile_context>
chip_gen: v7x
topology: tpu7x:2x2x1
jax: 0.10.0
libtpu: 0.0.40
codegen_flags: <defaults>
</compile_context>

<pallas_src>
import functools
import math

import jax
import jax.numpy as jnp
import numpy as np
from jax.experimental import pallas as pl
from jax.experimental.pallas import tpu as pltpu

INPUT_SIZE = 784
HIDDEN = 100
HPAD = 128                       # padded hidden width (lane-dense)
NUM_CLASSES = 10
OUT_PAD = 128                    # lane-dense logits width
TIMESTEPS = 5
STATS_ROWS = 16                  # 2*TIMESTEPS rounded up to a sublane multiple
_LOG_SQRT_2PI = 0.5 * math.log(2.0 * math.pi)
_NEG_BIG = -1e30                 # pad-column bias: exp(pad - max) == 0
_BIG = 1e18                      # masking constant for the min(diff^2) reduce


def _round_up(v, m):
    return (v + m - 1) // m * m


def _choose_tile(b, batch_tile):
    """Batch tile: multiple of 8, <= batch_tile, >=2 tiles when batch allows."""
    b8 = _round_up(b, 8)
    if b8 <= 128:                       # tiny batch: one tile
        return b8
    nt = max(2, -(-b8 // batch_tile))   # keep >=2 tiles for v7x megacore
    return _round_up(-(-b8 // nt), 8)


# ---------------------------------------------------------------------------
# Kernel 1: fused forward (xz, 5-step recurrence, logits/log_softmax) per tile
# ---------------------------------------------------------------------------
def _forward_kernel(x_ref, wih_ref, bias_ref, whh_ref, wout_ref, bout_ref,
                    out_ref, xz_ref, mom_ref, *, batch):
    tb = x_ref.shape[0]
    row = jax.lax.broadcasted_iota(jnp.int32, (tb, 1), 0) + pl.program_id(0) * tb
    rowmask = (row < batch).astype(jnp.float32)           # mask batch-pad rows

    # In-kernel bf16 cast (review item): x is read from HBM exactly once as
    # f32; the convert happens in-register before the MXU dot (f32 accumulate).
    xz = (jnp.dot(x_ref[...].astype(jnp.bfloat16), wih_ref[...],
                  preferred_element_type=jnp.float32) + bias_ref[...])
    xz_ref[...] = xz                                       # reused by kernel 2

    whh = whh_ref[...]
    h = jnp.zeros_like(xz)                                 # RNNCell default h0
    sh, sh2 = [], []
    for _ in range(TIMESTEPS):                             # static unroll (5)
        h = jnp.tanh(xz + jnp.dot(h, whh, preferred_element_type=jnp.float32))
        hm = h * rowmask                                   # pad lanes of h are 0
        sh.append(jnp.sum(hm, axis=0, keepdims=True))      # per-lane sum(h)
        sh2.append(jnp.sum(h * hm, axis=0, keepdims=True))  # per-lane sum(h^2)

    # self.out(h) + log_softmax.  Columns 10..127 of W_out are zero and the pad
    # bias is -1e30, so pad columns never win the max and contribute exp(.) = 0.
    logits = (jnp.dot(h, wout_ref[...], preferred_element_type=jnp.float32)
              + bout_ref[...])
    zmax = jnp.max(logits, axis=1, keepdims=True)
    zs = logits - zmax
    out_ref[...] = zs - jnp.log(jnp.sum(jnp.exp(zs), axis=1, keepdims=True))

    pad = jnp.zeros((STATS_ROWS - 2 * TIMESTEPS, HPAD), jnp.float32)
    mom_ref[0, :, :] = jnp.concatenate(sh + sh2 + [pad], axis=0)


# ---------------------------------------------------------------------------
# Kernel 2: RegularityEN logsumexp partials per tile (needs global mu/sigma)
# ---------------------------------------------------------------------------
def _regstats_kernel(xz_ref, whh_ref, stats_ref, q_ref, *, batch):
    tb = xz_ref.shape[0]
    row = jax.lax.broadcasted_iota(jnp.int32, (tb, 1), 0) + pl.program_id(0) * tb
    lane = jax.lax.broadcasted_iota(jnp.int32, (tb, HPAD), 1)
    valid = jnp.logical_and(row < batch, lane < HIDDEN)    # hoisted out of loop

    xz = xz_ref[...]
    whh = whh_ref[...]
    h = jnp.zeros_like(xz)
    ms, ss = [], []
    for t in range(TIMESTEPS):
        # Recompute h from xz (cheaper on HBM than storing 5x h per row).
        h = jnp.tanh(xz + jnp.dot(h, whh, preferred_element_type=jnp.float32))
        mu = stats_ref[t:t + 1, :]                         # (1,128) mu_t
        ninv = stats_ref[TIMESTEPS + t:TIMESTEPS + t + 1, :]  # (1,128) -0.5/var_t
        diff = h - mu
        d2 = diff * diff
        # max(q) == ninv * min(diff^2) (ninv < 0): the max is fused into the
        # diff^2 pass instead of a separate reduce over a fresh q array.
        lane_min = jnp.min(jnp.where(valid, d2, _BIG), axis=0, keepdims=True)
        lane_m = lane_min * ninv                           # per-lane max of q
        e = jnp.exp(d2 * ninv - lane_m)
        lane_s = jnp.sum(jnp.where(valid, e, 0.0), axis=0, keepdims=True)
        ms.append(lane_m)
        ss.append(lane_s)
    pad = jnp.zeros((STATS_ROWS - 2 * TIMESTEPS, HPAD), jnp.float32)
    q_ref[0, :, :] = jnp.concatenate(ms + ss + [pad], axis=0)


# ---------------------------------------------------------------------------
# Host wrappers
# ---------------------------------------------------------------------------
def prepare_params(params):
    """Pad / cast weights ONCE (not per forward call)."""
    w_ih_pad = jnp.zeros((INPUT_SIZE, HPAD), jnp.float32)
    w_ih_pad = w_ih_pad.at[:, :HIDDEN].set(params["w_ih_t"])
    bias = (params["b_ih"] + params["b_hh"]).reshape(1, HIDDEN)
    bias_pad = jnp.zeros((1, HPAD), jnp.float32).at[:, :HIDDEN].set(bias)
    w_hh_pad = jnp.zeros((HPAD, HPAD), jnp.float32)
    w_hh_pad = w_hh_pad.at[:HIDDEN, :HIDDEN].set(params["w_hh_t"])
    w_out_pad = jnp.zeros((HPAD, OUT_PAD), jnp.float32)
    w_out_pad = w_out_pad.at[:HIDDEN, :NUM_CLASSES].set(params["w_out_t"])
    b_out_pad = jnp.full((1, OUT_PAD), _NEG_BIG, jnp.float32)
    b_out_pad = b_out_pad.at[:, :NUM_CLASSES].set(
        params["b_out"].reshape(1, NUM_CLASSES))
    return {
        "w_ih_pad": w_ih_pad.astype(jnp.bfloat16),   # bf16 MXU stream
        "bias_pad": bias_pad,                        # b_ih + b_hh folded once
        "w_hh_pad": w_hh_pad,
        "w_out_pad": w_out_pad,
        "b_out_pad": b_out_pad,
    }


@functools.partial(jax.jit, static_argnames=("batch_tile",))
def _forward_core(x2d, prepped, batch_tile=1024):
    b = x2d.shape[0]
    tb = _choose_tile(b, batch_tile)
    b_pad = _round_up(b, tb)
    nt = b_pad // tb
    if b_pad != b:
        x2d = jnp.pad(x2d, ((0, b_pad - b), (0, 0)))   # zero pad rows (masked)

    fwd_cost = pl.CostEstimate(
        flops=2 * b_pad * (INPUT_SIZE * HPAD + TIMESTEPS * HPAD * HPAD
                           + HPAD * OUT_PAD),
        transcendentals=b_pad * (TIMESTEPS * HPAD + OUT_PAD),
        bytes_accessed=(b_pad * INPUT_SIZE * 4 + INPUT_SIZE * HPAD * 2
                        + 2 * HPAD * HPAD * 4 + 2 * HPAD * 4
                        + b_pad * OUT_PAD * 4 + b_pad * HPAD * 4
                        + nt * STATS_ROWS * HPAD * 4))

    out_pad, xz, moments = pl.pallas_call(
        functools.partial(_forward_kernel, batch=b),
        out_shape=(jax.ShapeDtypeStruct((b_pad, OUT_PAD), jnp.float32),
                   jax.ShapeDtypeStruct((b_pad, HPAD), jnp.float32),
                   jax.ShapeDtypeStruct((nt, STATS_ROWS, HPAD), jnp.float32)),
        grid=(nt,),
        in_specs=[pl.BlockSpec((tb, INPUT_SIZE), lambda i: (i, 0)),
                  pl.BlockSpec((INPUT_SIZE, HPAD), lambda i: (0, 0)),
                  pl.BlockSpec((1, HPAD), lambda i: (0, 0)),
                  pl.BlockSpec((HPAD, HPAD), lambda i: (0, 0)),
                  pl.BlockSpec((HPAD, OUT_PAD), lambda i: (0, 0)),
                  pl.BlockSpec((1, OUT_PAD), lambda i: (0, 0))],
        out_specs=(pl.BlockSpec((tb, OUT_PAD), lambda i: (i, 0)),
                   pl.BlockSpec((tb, HPAD), lambda i: (i, 0)),
                   pl.BlockSpec((1, STATS_ROWS, HPAD), lambda i: (i, 0, 0))),
        compiler_params=pltpu.CompilerParams(
            dimension_semantics=("parallel",),
            vmem_limit_bytes=32 * 1024 * 1024),
        cost_estimate=fwd_cost,
    )(x2d, prepped["w_ih_pad"], prepped["bias_pad"], prepped["w_hh_pad"],
      prepped["w_out_pad"], prepped["b_out_pad"])

    # Global per-step moments (tiny XLA): pad lanes are exactly 0, pad rows
    # were masked in-kernel, so summing everything is correct.  n = b * 100.
    n = float(b * HIDDEN)
    sums = jnp.sum(moments[:, :2 * TIMESTEPS, :], axis=(0, 2))
    sum_h, sum_h2 = sums[:TIMESTEPS], sums[TIMESTEPS:]
    mu = sum_h / n
    var = jnp.maximum((sum_h2 - n * mu * mu) / (n - 1.0), 1e-30)  # unbiased
    sigma = jnp.sqrt(var)
    ninv = -0.5 / var

    # Per-step scalars broadcast along lanes (VMEM input, no scalar reads).
    stats_in = jnp.zeros((STATS_ROWS, HPAD), jnp.float32)
    stats_in = stats_in.at[:2 * TIMESTEPS, :].set(
        jnp.concatenate([mu, ninv], axis=0)[:, None])

    reg_cost = pl.CostEstimate(
        flops=2 * b_pad * TIMESTEPS * HPAD * HPAD,
        transcendentals=2 * b_pad * TIMESTEPS * HPAD,
        bytes_accessed=(b_pad * HPAD * 4 + HPAD * HPAD * 4
                        + STATS_ROWS * HPAD * 4 + nt * STATS_ROWS * HPAD * 4))

    qstats = pl.pallas_call(
        functools.partial(_regstats_kernel, batch=b),
        out_shape=jax.ShapeDtypeStruct((nt, STATS_ROWS, HPAD), jnp.float32),
        grid=(nt,),
        in_specs=[pl.BlockSpec((tb, HPAD), lambda i: (i, 0)),
                  pl.BlockSpec((HPAD, HPAD), lambda i: (0, 0)),
                  pl.BlockSpec((STATS_ROWS, HPAD), lambda i: (0, 0))],
        out_specs=pl.BlockSpec((1, STATS_ROWS, HPAD), lambda i: (i, 0, 0)),
        compiler_params=pltpu.CompilerParams(
            dimension_semantics=("parallel",),
            vmem_limit_bytes=32 * 1024 * 1024),
        cost_estimate=reg_cost,
    )(xz, prepped["w_hh_pad"], stats_in)

    # Associative combine of the per-tile per-lane logsumexp partials.
    lane_m = qstats[:, :TIMESTEPS, :]                       # (nt, 5, 128)
    lane_s = qstats[:, TIMESTEPS:2 * TIMESTEPS, :]
    m_q = jnp.max(lane_m, axis=(0, 2))                      # (5,)  max of q
    S = jnp.sum(lane_s * jnp.exp(lane_m - m_q[None, :, None]), axis=(0, 2))
    log_p_max = m_q - jnp.log(sigma) - _LOG_SQRT_2PI
    sum_p = log_p_max + jnp.log(S)
    # COMP starts at 0 (x_history_stack is None, isTest=False); the torch
    # `if COMP_max > log_p_max` branch becomes a where.
    comp = jnp.where(log_p_max < 0.0,
                     jnp.log(1.0 + S * jnp.exp(log_p_max)),
                     log_p_max + jnp.log(jnp.exp(-log_p_max) + S))
    lnml = comp - sum_p

    return out_pad[:b, :NUM_CLASSES], mu, sigma, comp, lnml


def rnn_uam_forward(x, prepped, *, batch_tile=1024):
    """Mirrors RNN_UAM.forward(x) default path.

    Returns (out, x_history_stack, COMP_stack, MDL) like the torch module.
    """
    x2d = x.reshape(-1, INPUT_SIZE)                         # x.view(-1, 784)
    out, mu, sigma, comp, lnml = _forward_core(x2d, prepped,
                                               batch_tile=batch_tile)
    b = x2d.shape[0]
    n = float(b * HIDDEN)
    # inputRN=False -> the "input" slots are the literal -1 used by the module.
    x_history_stack = [-1.0]
    comp_stack = [-1.0]
    mdl = [-1.0]
    for t in range(TIMESTEPS):
        x_history_stack.append((mu[t], sigma[t], n))
        comp_stack.append(comp[t])
        mdl.append(lnml[t])
    return out, x_history_stack, comp_stack, mdl


def init_params(key):
    """Deterministic synthetic init matching nn.RNNCell / nn.Linear shapes."""
    k = 1.0 / math.sqrt(HIDDEN)
    keys = jax.random.split(key, 6)
    w_ih = jax.random.uniform(keys[0], (HIDDEN, INPUT_SIZE), jnp.float32, -k, k)
    w_hh = jax.random.uniform(keys[1], (HIDDEN, HIDDEN), jnp.float32, -k, k)
    b_ih = jax.random.uniform(keys[2], (HIDDEN,), jnp.float32, -k, k)
    b_hh = jax.random.uniform(keys[3], (HIDDEN,), jnp.float32, -k, k)
    w_out = jax.random.uniform(keys[4], (NUM_CLASSES, HIDDEN), jnp.float32, -k, k)
    b_out = jax.random.uniform(keys[5], (NUM_CLASSES,), jnp.float32, -k, k)
    return {
        "w_ih_t": w_ih.T,                        # (784, 100)
        "b_ih": b_ih.reshape(1, HIDDEN),         # (1, 100)
        "w_hh_t": w_hh.T,                        # (100, 100)
        "b_hh": b_hh.reshape(1, HIDDEN),         # (1, 100)
        "w_out_t": w_out.T,                      # (100, 10)
        "b_out": b_out.reshape(1, NUM_CLASSES),  # (1, 10)
    }


def reference_forward(x, params):
    """Pure-JAX reference with the same bf16 x/W_ih quantization as the kernel."""
    hp = jax.lax.Precision.HIGHEST
    x2d = x.reshape(-1, INPUT_SIZE)
    xb = x2d.astype(jnp.bfloat16).astype(jnp.float32)
    wb = params["w_ih_t"].astype(jnp.bfloat16).astype(jnp.float32)
    xz = jnp.dot(xb, wb, precision=hp) + params["b_ih"] + params["b_hh"]
    b = x2d.shape[0]
    h = jnp.zeros((b, HIDDEN), jnp.float32)
    stats = []
    for _ in range(TIMESTEPS):
        h = jnp.tanh(xz + jnp.dot(h, params["w_hh_t"], precision=hp))
        mu = jnp.mean(h)
        sigma = jnp.std(h, ddof=1)
        logp = (-((h - mu) ** 2) / (2.0 * sigma ** 2)
                - jnp.log(sigma) - _LOG_SQRT_2PI)
        m = jnp.max(logp)
        s = jnp.sum(jnp.exp(logp - m))
        sum_p = m + jnp.log(s)
        comp = jnp.where(m < 0.0,
                         jnp.log(1.0 + s * jnp.exp(m)),
                         m + jnp.log(jnp.exp(-m) + s))
        stats.append(jnp.stack([mu, sigma, comp, comp - sum_p]))
    logits = jnp.dot(h, params["w_out_t"], precision=hp) + params["b_out"]
    return jax.nn.log_softmax(logits, axis=1), jnp.stack(stats)


if __name__ == "__main__":
    key = jax.random.PRNGKey(0)
    pkey, xkey = jax.random.split(key)
    params = init_params(pkey)
    prepped = prepare_params(params)

    # MNIST-like NCHW input: batch=2, 1x28x28 -> flattened to (2, 784) inside.
    x = jax.random.normal(xkey, (2, 1, 28, 28), jnp.float32)

    out, x_hist, comp_stack, mdl = rnn_uam_forward(x, prepped)
    out = jax.block_until_ready(out)

    # Correctness check against a pure-JAX reference of the same numerics.
    ref_out, ref_stats = reference_forward(x, params)
    np.testing.assert_allclose(np.asarray(out), np.asarray(ref_out),
                               rtol=2e-3, atol=2e-3)
    kernel_stats = np.asarray(jnp.stack([
        jnp.stack([x_hist[t + 1][0], x_hist[t + 1][1],
                   comp_stack[t + 1], mdl[t + 1]])
        for t in range(TIMESTEPS)]))
    np.testing.assert_allclose(kernel_stats, np.asarray(ref_stats),
                               rtol=2e-3, atol=2e-3)

    print("KERNEL_OK")
</pallas_src>

<mosaic_0001>
module attributes {stable_mosaic.version = 11 : i64} {
  func.func @_forward_kernel(%arg0: i32, %arg1: memref<8x784xf32, #tpu.memory_space<vmem>>, %arg2: memref<784x128xbf16, #tpu.memory_space<vmem>>, %arg3: memref<1x128xf32, #tpu.memory_space<vmem>>, %arg4: memref<128x128xf32, #tpu.memory_space<vmem>>, %arg5: memref<128x128xf32, #tpu.memory_space<vmem>>, %arg6: memref<1x128xf32, #tpu.memory_space<vmem>>, %arg7: memref<8x128xf32, #tpu.memory_space<vmem>>, %arg8: memref<8x128xf32, #tpu.memory_space<vmem>>, %arg9: memref<1x16x128xf32, #tpu.memory_space<vmem>>) attributes {dimension_semantics = [#tpu.dimension_semantics<parallel>], iteration_bounds = array<i64: 1>, scalar_prefetch = 0 : i64, scratch_operands = 0 : i64, tpu.core_type = #tpu.core_type<tc>, window_params = [{transform_indices = @transform_0, window_bounds = array<i64: 8, 784>}, {pipeline_mode = #tpu.pipeline_mode<synchronous>, transform_indices = @transform_1, window_bounds = array<i64: 784, 128>}, {pipeline_mode = #tpu.pipeline_mode<synchronous>, transform_indices = @transform_2, window_bounds = array<i64: 1, 128>}, {pipeline_mode = #tpu.pipeline_mode<synchronous>, transform_indices = @transform_3, window_bounds = array<i64: 128, 128>}, {pipeline_mode = #tpu.pipeline_mode<synchronous>, transform_indices = @transform_4, window_bounds = array<i64: 128, 128>}, {pipeline_mode = #tpu.pipeline_mode<synchronous>, transform_indices = @transform_5, window_bounds = array<i64: 1, 128>}, {transform_indices = @transform_6, window_bounds = array<i64: 8, 128>}, {transform_indices = @transform_7, window_bounds = array<i64: 8, 128>}, {transform_indices = @transform_8, window_bounds = array<i64: 1, 16, 128>}]} {
    %0 = tpu.iota {dimensions = array<i32: 0>} : vector<8x1xi32>
    %c8_i32 = arith.constant 8 : i32
    %1 = arith.muli %arg0, %c8_i32 : i32
    %2 = vector.broadcast %1 : i32 to vector<8x1xi32>
    %3 = arith.addi %0, %2 : vector<8x1xi32>
    %c2_i32 = arith.constant 2 : i32
    %4 = vector.broadcast %c2_i32 : i32 to vector<8x1xi32>
    %5 = arith.cmpi slt, %3, %4 : vector<8x1xi32>
    %6 = arith.extui %5 : vector<8x1xi1> to vector<8x1xi32>
    %7 = arith.sitofp %6 : vector<8x1xi32> to vector<8x1xf32>
    %c0 = arith.constant 0 : index
    %c0_0 = arith.constant 0 : index
    %8 = vector.load %arg1[%c0, %c0_0] : memref<8x784xf32, #tpu.memory_space<vmem>>, vector<8x784xf32>
    %9 = arith.truncf %8 : vector<8x784xf32> to vector<8x784xbf16>
    %c0_1 = arith.constant 0 : index
    %c0_2 = arith.constant 0 : index
    %10 = vector.load %arg2[%c0_1, %c0_2] : memref<784x128xbf16, #tpu.memory_space<vmem>>, vector<784x128xbf16>
    %cst = arith.constant dense<0.000000e+00> : vector<8x128xf32>
    %11 = tpu.matmul %9, %10, %cst {dimension_numbers = #tpu.dot_dimension_numbers<[1], [0], [0], [1], [0, 0, 1, 1], [], []>} : vector<8x784xbf16>, vector<784x128xbf16>, vector<8x128xf32> -> vector<8x128xf32>
    %c0_3 = arith.constant 0 : index
    %c0_4 = arith.constant 0 : index
    %12 = vector.load %arg3[%c0_3, %c0_4] : memref<1x128xf32, #tpu.memory_space<vmem>>, vector<1x128xf32>
    %13 = vector.broadcast %12 : vector<1x128xf32> to vector<8x128xf32>
    %14 = arith.addf %11, %13 : vector<8x128xf32>
    %c0_5 = arith.constant 0 : index
    %c0_6 = arith.constant 0 : index
    %15 = vector.load %arg8[%c0_5, %c0_6] : memref<8x128xf32, #tpu.memory_space<vmem>>, vector<8x128xf32>
    tpu.vector_store %arg8[%c0_5, %c0_6], %14 {strides = array<i32>} : memref<8x128xf32, #tpu.memory_space<vmem>>, vector<8x128xf32>,
    %c0_7 = arith.constant 0 : index
    %c0_8 = arith.constant 0 : index
    %16 = vector.load %arg4[%c0_7, %c0_8] : memref<128x128xf32, #tpu.memory_space<vmem>>, vector<128x128xf32>
    %cst_9 = arith.constant 0.000000e+00 : f32
    %17 = vector.broadcast %cst_9 : f32 to vector<8x128xf32>
    %cst_10 = arith.constant dense<0.000000e+00> : vector<8x128xf32>
    %18 = tpu.matmul %17, %16, %cst_10 {dimension_numbers = #tpu.dot_dimension_numbers<[1], [0], [0], [1], [0, 0, 1, 1], [], []>} : vector<8x128xf32>, vector<128x128xf32>, vector<8x128xf32> -> vector<8x128xf32>
    %19 = arith.addf %14, %18 : vector<8x128xf32>
    %20 = math.tanh %19 : vector<8x128xf32>
    %21 = vector.broadcast %7 : vector<8x1xf32> to vector<8x128xf32>
    %22 = arith.mulf %20, %21 : vector<8x128xf32>
    %cst_11 = arith.constant dense<0.000000e+00> : vector<128xf32>
    %23 = vector.multi_reduction <add>, %22, %cst_11 [0] : vector<8x128xf32> to vector<128xf32>
    %24 = vector.shape_cast %23 : vector<128xf32> to vector<1x128xf32>
    %25 = arith.mulf %20, %22 : vector<8x128xf32>
    %cst_12 = arith.constant dense<0.000000e+00> : vector<128xf32>
    %26 = vector.multi_reduction <add>, %25, %cst_12 [0] : vector<8x128xf32> to vector<128xf32>
    %27 = vector.shape_cast %26 : vector<128xf32> to vector<1x128xf32>
    %cst_13 = arith.constant dense<0.000000e+00> : vector<8x128xf32>
    %28 = tpu.matmul %20, %16, %cst_13 {dimension_numbers = #tpu.dot_dimension_numbers<[1], [0], [0], [1], [0, 0, 1, 1], [], []>} : vector<8x128xf32>, vector<128x128xf32>, vector<8x128xf32> -> vector<8x128xf32>
    %29 = arith.addf %14, %28 : vector<8x128xf32>
    %30 = math.tanh %29 : vector<8x128xf32>
    %31 = vector.broadcast %7 : vector<8x1xf32> to vector<8x128xf32>
    %32 = arith.mulf %30, %31 : vector<8x128xf32>
    %cst_14 = arith.constant dense<0.000000e+00> : vector<128xf32>
    %33 = vector.multi_reduction <add>, %32, %cst_14 [0] : vector<8x128xf32> to vector<128xf32>
    %34 = vector.shape_cast %33 : vector<128xf32> to vector<1x128xf32>
    %35 = arith.mulf %30, %32 : vector<8x128xf32>
    %cst_15 = arith.constant dense<0.000000e+00> : vector<128xf32>
    %36 = vector.multi_reduction <add>, %35, %cst_15 [0] : vector<8x128xf32> to vector<128xf32>
    %37 = vector.shape_cast %36 : vector<128xf32> to vector<1x128xf32>
    %cst_16 = arith.constant dense<0.000000e+00> : vector<8x128xf32>
    %38 = tpu.matmul %30, %16, %cst_16 {dimension_numbers = #tpu.dot_dimension_numbers<[1], [0], [0], [1], [0, 0, 1, 1], [], []>} : vector<8x128xf32>, vector<128x128xf32>, vector<8x128xf32> -> vector<8x128xf32>
    %39 = arith.addf %14, %38 : vector<8x128xf32>
    %40 = math.tanh %39 : vector<8x128xf32>
    %41 = vector.broadcast %7 : vector<8x1xf32> to vector<8x128xf32>
    %42 = arith.mulf %40, %41 : vector<8x128xf32>
    %cst_17 = arith.constant dense<0.000000e+00> : vector<128xf32>
    %43 = vector.multi_reduction <add>, %42, %cst_17 [0] : vector<8x128xf32> to vector<128xf32>
    %44 = vector.shape_cast %43 : vector<128xf32> to vector<1x128xf32>
    %45 = arith.mulf %40, %42 : vector<8x128xf32>
    %cst_18 = arith.constant dense<0.000000e+00> : vector<128xf32>
    %46 = vector.multi_reduction <add>, %45, %cst_18 [0] : vector<8x128xf32> to vector<128xf32>
    %47 = vector.shape_cast %46 : vector<128xf32> to vector<1x128xf32>
    %cst_19 = arith.constant dense<0.000000e+00> : vector<8x128xf32>
    %48 = tpu.matmul %40, %16, %cst_19 {dimension_numbers = #tpu.dot_dimension_numbers<[1], [0], [0], [1], [0, 0, 1, 1], [], []>} : vector<8x128xf32>, vector<128x128xf32>, vector<8x128xf32> -> vector<8x128xf32>
    %49 = arith.addf %14, %48 : vector<8x128xf32>
    %50 = math.tanh %49 : vector<8x128xf32>
    %51 = vector.broadcast %7 : vector<8x1xf32> to vector<8x128xf32>
    %52 = arith.mulf %50, %51 : vector<8x128xf32>
    %cst_20 = arith.constant dense<0.000000e+00> : vector<128xf32>
    %53 = vector.multi_reduction <add>, %52, %cst_20 [0] : vector<8x128xf32> to vector<128xf32>
    %54 = vector.shape_cast %53 : vector<128xf32> to vector<1x128xf32>
    %55 = arith.mulf %50, %52 : vector<8x128xf32>
    %cst_21 = arith.constant dense<0.000000e+00> : vector<128xf32>
    %56 = vector.multi_reduction <add>, %55, %cst_21 [0] : vector<8x128xf32> to vector<128xf32>
    %57 = vector.shape_cast %56 : vector<128xf32> to vector<1x128xf32>
    %cst_22 = arith.constant dense<0.000000e+00> : vector<8x128xf32>
    %58 = tpu.matmul %50, %16, %cst_22 {dimension_numbers = #tpu.dot_dimension_numbers<[1], [0], [0], [1], [0, 0, 1, 1], [], []>} : vector<8x128xf32>, vector<128x128xf32>, vector<8x128xf32> -> vector<8x128xf32>
    %59 = arith.addf %14, %58 : vector<8x128xf32>
    %60 = math.tanh %59 : vector<8x128xf32>
    %61 = vector.broadcast %7 : vector<8x1xf32> to vector<8x128xf32>
    %62 = arith.mulf %60, %61 : vector<8x128xf32>
    %cst_23 = arith.constant dense<0.000000e+00> : vector<128xf32>
    %63 = vector.multi_reduction <add>, %62, %cst_23 [0] : vector<8x128xf32> to vector<128xf32>
    %64 = vector.shape_cast %63 : vector<128xf32> to vector<1x128xf32>
    %65 = arith.mulf %60, %62 : vector<8x128xf32>
    %cst_24 = arith.constant dense<0.000000e+00> : vector<128xf32>
    %66 = vector.multi_reduction <add>, %65, %cst_24 [0] : vector<8x128xf32> to vector<128xf32>
    %67 = vector.shape_cast %66 : vector<128xf32> to vector<1x128xf32>
    %c0_25 = arith.constant 0 : index
    %c0_26 = arith.constant 0 : index
    %68 = vector.load %arg5[%c0_25, %c0_26] : memref<128x128xf32, #tpu.memory_space<vmem>>, vector<128x128xf32>
    %cst_27 = arith.constant dense<0.000000e+00> : vector<8x128xf32>
    %69 = tpu.matmul %60, %68, %cst_27 {dimension_numbers = #tpu.dot_dimension_numbers<[1], [0], [0], [1], [0, 0, 1, 1], [], []>} : vector<8x128xf32>, vector<128x128xf32>, vector<8x128xf32> -> vector<8x128xf32>
    %c0_28 = arith.constant 0 : index
    %c0_29 = arith.constant 0 : index
    %70 = vector.load %arg6[%c0_28, %c0_29] : memref<1x128xf32, #tpu.memory_space<vmem>>, vector<1x128xf32>
    %71 = vector.broadcast %70 : vector<1x128xf32> to vector<8x128xf32>
    %72 = arith.addf %69, %71 : vector<8x128xf32>
    %cst_30 = arith.constant dense<0xFF800000> : vector<8xf32>
    %73 = vector.multi_reduction <maximumf>, %72, %cst_30 [1] : vector<8x128xf32> to vector<8xf32>
    %74 = vector.shape_cast %73 : vector<8xf32> to vector<8x1xf32>
    %75 = vector.broadcast %74 : vector<8x1xf32> to vector<8x128xf32>
    %76 = arith.subf %72, %75 : vector<8x128xf32>
    %77 = math.exp %76 : vector<8x128xf32>
    %cst_31 = arith.constant dense<0.000000e+00> : vector<8xf32>
    %78 = vector.multi_reduction <add>, %77, %cst_31 [1] : vector<8x128xf32> to vector<8xf32>
    %79 = vector.shape_cast %78 : vector<8xf32> to vector<8x1xf32>
    %80 = math.log %79 : vector<8x1xf32>
    %81 = vector.broadcast %80 : vector<8x1xf32> to vector<8x128xf32>
    %82 = arith.subf %76, %81 : vector<8x128xf32>
    %c0_32 = arith.constant 0 : index
    %c0_33 = arith.constant 0 : index
    %83 = vector.load %arg7[%c0_32, %c0_33] : memref<8x128xf32, #tpu.memory_space<vmem>>, vector<8x128xf32>
    tpu.vector_store %arg7[%c0_32, %c0_33], %82 {strides = array<i32>} : memref<8x128xf32, #tpu.memory_space<vmem>>, vector<8x128xf32>,
    %cst_34 = arith.constant 0.000000e+00 : f32
    %84 = vector.broadcast %cst_34 : f32 to vector<6x128xf32>
    %85 = tpu.concatenate %24, %34, %44, %54, %64, %27, %37, %47, %57, %67, %84 in 0 : vector<1x128xf32>, vector<1x128xf32>, vector<1x128xf32>, vector<1x128xf32>, vector<1x128xf32>, vector<1x128xf32>, vector<1x128xf32>, vector<1x128xf32>, vector<1x128xf32>, vector<1x128xf32>, vector<6x128xf32> -> vector<16x128xf32>
    %c0_35 = arith.constant 0 : index
    %c0_36 = arith.constant 0 : index
    %c0_37 = arith.constant 0 : index
    %86 = vector.load %arg9[%c0_35, %c0_36, %c0_37] : memref<1x16x128xf32, #tpu.memory_space<vmem>>, vector<1x16x128xf32>
    %87 = vector.shape_cast %86 : vector<1x16x128xf32> to vector<16x128xf32>
    %88 = vector.shape_cast %85 : vector<16x128xf32> to vector<1x16x128xf32>
    tpu.vector_store %arg9[%c0_35, %c0_36, %c0_37], %88 {strides = array<i32>} : memref<1x16x128xf32, #tpu.memory_space<vmem>>, vector<1x16x128xf32>,
    return
  }
  func.func @transform_0(%arg0: i32) -> (i32, i32) {
    %c0_i32 = arith.constant 0 : i32
    %c0_i32_0 = arith.constant 0 : i32
    return %arg0, %c0_i32 : i32, i32
  }
  func.func @transform_1(%arg0: i32) -> (i32, i32) {
    %c0_i32 = arith.constant 0 : i32
    %c0_i32_0 = arith.constant 0 : i32
    %c0_i32_1 = arith.constant 0 : i32
    return %c0_i32, %c0_i32_0 : i32, i32
  }
  func.func @transform_2(%arg0: i32) -> (i32, i32) {
    %c0_i32 = arith.constant 0 : i32
    %c0_i32_0 = arith.constant 0 : i32
    %c0_i32_1 = arith.constant 0 : i32
    return %c0_i32, %c0_i32_0 : i32, i32
  }
  func.func @transform_3(%arg0: i32) -> (i32, i32) {
    %c0_i32 = arith.constant 0 : i32
    %c0_i32_0 = arith.constant 0 : i32
    %c0_i32_1 = arith.constant 0 : i32
    return %c0_i32, %c0_i32_0 : i32, i32
  }
  func.func @transform_4(%arg0: i32) -> (i32, i32) {
    %c0_i32 = arith.constant 0 : i32
    %c0_i32_0 = arith.constant 0 : i32
    %c0_i32_1 = arith.constant 0 : i32
    return %c0_i32, %c0_i32_0 : i32, i32
  }
  func.func @transform_5(%arg0: i32) -> (i32, i32) {
    %c0_i32 = arith.constant 0 : i32
    %c0_i32_0 = arith.constant 0 : i32
    %c0_i32_1 = arith.constant 0 : i32
    return %c0_i32, %c0_i32_0 : i32, i32
  }
  func.func @transform_6(%arg0: i32) -> (i32, i32) {
    %c0_i32 = arith.constant 0 : i32
    %c0_i32_0 = arith.constant 0 : i32
    return %arg0, %c0_i32 : i32, i32
  }
  func.func @transform_7(%arg0: i32) -> (i32, i32) {
    %c0_i32 = arith.constant 0 : i32
    %c0_i32_0 = arith.constant 0 : i32
    return %arg0, %c0_i32 : i32, i32
  }
  func.func @transform_8(%arg0: i32) -> (i32, i32, i32) {
    %c0_i32 = arith.constant 0 : i32
    %c0_i32_0 = arith.constant 0 : i32
    %c0_i32_1 = arith.constant 0 : i32
    return %arg0, %c0_i32, %c0_i32_0 : i32, i32, i32
  }
}

module attributes {stable_mosaic.version = 11 : i64} {
  func.func @_regstats_kernel(%arg0: i32, %arg1: memref<8x128xf32, #tpu.memory_space<vmem>>, %arg2: memref<128x128xf32, #tpu.memory_space<vmem>>, %arg3: memref<16x128xf32, #tpu.memory_space<vmem>>, %arg4: memref<1x16x128xf32, #tpu.memory_space<vmem>>) attributes {dimension_semantics = [#tpu.dimension_semantics<parallel>], iteration_bounds = array<i64: 1>, scalar_prefetch = 0 : i64, scratch_operands = 0 : i64, tpu.core_type = #tpu.core_type<tc>, window_params = [{transform_indices = @transform_0, window_bounds = array<i64: 8, 128>}, {pipeline_mode = #tpu.pipeline_mode<synchronous>, transform_indices = @transform_1, window_bounds = array<i64: 128, 128>}, {pipeline_mode = #tpu.pipeline_mode<synchronous>, transform_indices = @transform_2, window_bounds = array<i64: 16, 128>}, {transform_indices = @transform_3, window_bounds = array<i64: 1, 16, 128>}]} {
    %0 = tpu.iota {dimensions = array<i32: 0>} : vector<8x1xi32>
    %c8_i32 = arith.constant 8 : i32
    %1 = arith.muli %arg0, %c8_i32 : i32
    %2 = vector.broadcast %1 : i32 to vector<8x1xi32>
    %3 = arith.addi %0, %2 : vector<8x1xi32>
    %4 = tpu.iota {dimensions = array<i32: 1>} : vector<8x128xi32>
    %c2_i32 = arith.constant 2 : i32
    %5 = vector.broadcast %c2_i32 : i32 to vector<8x1xi32>
    %6 = arith.cmpi slt, %3, %5 : vector<8x1xi32>
    %c100_i32 = arith.constant 100 : i32
    %7 = vector.broadcast %c100_i32 : i32 to vector<8x128xi32>
    %8 = arith.cmpi slt, %4, %7 : vector<8x128xi32>
    %9 = vector.broadcast %6 : vector<8x1xi1> to vector<8x128xi1>
    %10 = arith.andi %9, %8 : vector<8x128xi1>
    %c0 = arith.constant 0 : index
    %c0_0 = arith.constant 0 : index
    %11 = vector.load %arg1[%c0, %c0_0] : memref<8x128xf32, #tpu.memory_space<vmem>>, vector<8x128xf32>
    %c0_1 = arith.constant 0 : index
    %c0_2 = arith.constant 0 : index
    %12 = vector.load %arg2[%c0_1, %c0_2] : memref<128x128xf32, #tpu.memory_space<vmem>>, vector<128x128xf32>
    %cst = arith.constant 0.000000e+00 : f32
    %13 = vector.broadcast %cst : f32 to vector<8x128xf32>
    %cst_3 = arith.constant dense<0.000000e+00> : vector<8x128xf32>
    %14 = tpu.matmul %13, %12, %cst_3 {dimension_numbers = #tpu.dot_dimension_numbers<[1], [0], [0], [1], [0, 0, 1, 1], [], []>} : vector<8x128xf32>, vector<128x128xf32>, vector<8x128xf32> -> vector<8x128xf32>
    %15 = arith.addf %11, %14 : vector<8x128xf32>
    %16 = math.tanh %15 : vector<8x128xf32>
    %c0_4 = arith.constant 0 : index
    %c0_5 = arith.constant 0 : index
    %17 = vector.load %arg3[%c0_4, %c0_5] : memref<16x128xf32, #tpu.memory_space<vmem>>, vector<1x128xf32>
    %c5 = arith.constant 5 : index
    %c0_6 = arith.constant 0 : index
    %18 = vector.load %arg3[%c5, %c0_6] : memref<16x128xf32, #tpu.memory_space<vmem>>, vector<1x128xf32>
    %19 = vector.broadcast %17 : vector<1x128xf32> to vector<8x128xf32>
    %20 = arith.subf %16, %19 : vector<8x128xf32>
    %21 = arith.mulf %20, %20 : vector<8x128xf32>
    %cst_7 = arith.constant 9.99999984E+17 : f32
    %22 = vector.broadcast %cst_7 : f32 to vector<8x128xf32>
    %23 = arith.select %10, %21, %22 : vector<8x128xi1>, vector<8x128xf32>
    %cst_8 = arith.constant dense<0x7F800000> : vector<128xf32>
    %24 = vector.multi_reduction <minimumf>, %23, %cst_8 [0] : vector<8x128xf32> to vector<128xf32>
    %25 = vector.shape_cast %24 : vector<128xf32> to vector<1x128xf32>
    %26 = arith.mulf %25, %18 : vector<1x128xf32>
    %27 = vector.broadcast %18 : vector<1x128xf32> to vector<8x128xf32>
    %28 = arith.mulf %21, %27 : vector<8x128xf32>
    %29 = vector.broadcast %26 : vector<1x128xf32> to vector<8x128xf32>
    %30 = arith.subf %28, %29 : vector<8x128xf32>
    %31 = math.exp %30 : vector<8x128xf32>
    %cst_9 = arith.constant 0.000000e+00 : f32
    %32 = vector.broadcast %cst_9 : f32 to vector<8x128xf32>
    %33 = arith.select %10, %31, %32 : vector<8x128xi1>, vector<8x128xf32>
    %cst_10 = arith.constant dense<0.000000e+00> : vector<128xf32>
    %34 = vector.multi_reduction <add>, %33, %cst_10 [0] : vector<8x128xf32> to vector<128xf32>
    %35 = vector.shape_cast %34 : vector<128xf32> to vector<1x128xf32>
    %cst_11 = arith.constant dense<0.000000e+00> : vector<8x128xf32>
    %36 = tpu.matmul %16, %12, %cst_11 {dimension_numbers = #tpu.dot_dimension_numbers<[1], [0], [0], [1], [0, 0, 1, 1], [], []>} : vector<8x128xf32>, vector<128x128xf32>, vector<8x128xf32> -> vector<8x128xf32>
    %37 = arith.addf %11, %36 : vector<8x128xf32>
    %38 = math.tanh %37 : vector<8x128xf32>
    %c1 = arith.constant 1 : index
    %c0_12 = arith.constant 0 : index
    %39 = vector.load %arg3[%c1, %c0_12] : memref<16x128xf32, #tpu.memory_space<vmem>>, vector<1x128xf32>
    %c6 = arith.constant 6 : index
    %c0_13 = arith.constant 0 : index
    %40 = vector.load %arg3[%c6, %c0_13] : memref<16x128xf32, #tpu.memory_space<vmem>>, vector<1x128xf32>
    %41 = vector.broadcast %39 : vector<1x128xf32> to vector<8x128xf32>
    %42 = arith.subf %38, %41 : vector<8x128xf32>
    %43 = arith.mulf %42, %42 : vector<8x128xf32>
    %cst_14 = arith.constant 9.99999984E+17 : f32
    %44 = vector.broadcast %cst_14 : f32 to vector<8x128xf32>
    %45 = arith.select %10, %43, %44 : vector<8x128xi1>, vector<8x128xf32>
    %cst_15 = arith.constant dense<0x7F800000> : vector<128xf32>
    %46 = vector.multi_reduction <minimumf>, %45, %cst_15 [0] : vector<8x128xf32> to vector<128xf32>
    %47 = vector.shape_cast %46 : vector<128xf32> to vector<1x128xf32>
    %48 = arith.mulf %47, %40 : vector<1x128xf32>
    %49 = vector.broadcast %40 : vector<1x128xf32> to vector<8x128xf32>
    %50 = arith.mulf %43, %49 : vector<8x128xf32>
    %51 = vector.broadcast %48 : vector<1x128xf32> to vector<8x128xf32>
    %52 = arith.subf %50, %51 : vector<8x128xf32>
    %53 = math.exp %52 : vector<8x128xf32>
    %cst_16 = arith.constant 0.000000e+00 : f32
    %54 = vector.broadcast %cst_16 : f32 to vector<8x128xf32>
    %55 = arith.select %10, %53, %54 : vector<8x128xi1>, vector<8x128xf32>
    %cst_17 = arith.constant dense<0.000000e+00> : vector<128xf32>
    %56 = vector.multi_reduction <add>, %55, %cst_17 [0] : vector<8x128xf32> to vector<128xf32>
    %57 = vector.shape_cast %56 : vector<128xf32> to vector<1x128xf32>
    %cst_18 = arith.constant dense<0.000000e+00> : vector<8x128xf32>
    %58 = tpu.matmul %38, %12, %cst_18 {dimension_numbers = #tpu.dot_dimension_numbers<[1], [0], [0], [1], [0, 0, 1, 1], [], []>} : vector<8x128xf32>, vector<128x128xf32>, vector<8x128xf32> -> vector<8x128xf32>
    %59 = arith.addf %11, %58 : vector<8x128xf32>
    %60 = math.tanh %59 : vector<8x128xf32>
    %c2 = arith.constant 2 : index
    %c0_19 = arith.constant 0 : index
    %61 = vector.load %arg3[%c2, %c0_19] : memref<16x128xf32, #tpu.memory_space<vmem>>, vector<1x128xf32>
    %c7 = arith.constant 7 : index
    %c0_20 = arith.constant 0 : index
    %62 = vector.load %arg3[%c7, %c0_20] : memref<16x128xf32, #tpu.memory_space<vmem>>, vector<1x128xf32>
    %63 = vector.broadcast %61 : vector<1x128xf32> to vector<8x128xf32>
    %64 = arith.subf %60, %63 : vector<8x128xf32>
    %65 = arith.mulf %64, %64 : vector<8x128xf32>
    %cst_21 = arith.constant 9.99999984E+17 : f32
    %66 = vector.broadcast %cst_21 : f32 to vector<8x128xf32>
    %67 = arith.select %10, %65, %66 : vector<8x128xi1>, vector<8x128xf32>
    %cst_22 = arith.constant dense<0x7F800000> : vector<128xf32>
    %68 = vector.multi_reduction <minimumf>, %67, %cst_22 [0] : vector<8x128xf32> to vector<128xf32>
    %69 = vector.shape_cast %68 : vector<128xf32> to vector<1x128xf32>
    %70 = arith.mulf %69, %62 : vector<1x128xf32>
    %71 = vector.broadcast %62 : vector<1x128xf32> to vector<8x128xf32>
    %72 = arith.mulf %65, %71 : vector<8x128xf32>
    %73 = vector.broadcast %70 : vector<1x128xf32> to vector<8x128xf32>
    %74 = arith.subf %72, %73 : vector<8x128xf32>
    %75 = math.exp %74 : vector<8x128xf32>
    %cst_23 = arith.constant 0.000000e+00 : f32
    %76 = vector.broadcast %cst_23 : f32 to vector<8x128xf32>
    %77 = arith.select %10, %75, %76 : vector<8x128xi1>, vector<8x128xf32>
    %cst_24 = arith.constant dense<0.000000e+00> : vector<128xf32>
    %78 = vector.multi_reduction <add>, %77, %cst_24 [0] : vector<8x128xf32> to vector<128xf32>
    %79 = vector.shape_cast %78 : vector<128xf32> to vector<1x128xf32>
    %cst_25 = arith.constant dense<0.000000e+00> : vector<8x128xf32>
    %80 = tpu.matmul %60, %12, %cst_25 {dimension_numbers = #tpu.dot_dimension_numbers<[1], [0], [0], [1], [0, 0, 1, 1], [], []>} : vector<8x128xf32>, vector<128x128xf32>, vector<8x128xf32> -> vector<8x128xf32>
    %81 = arith.addf %11, %80 : vector<8x128xf32>
    %82 = math.tanh %81 : vector<8x128xf32>
    %c3 = arith.constant 3 : index
    %c0_26 = arith.constant 0 : index
    %83 = vector.load %arg3[%c3, %c0_26] : memref<16x128xf32, #tpu.memory_space<vmem>>, vector<1x128xf32>
    %c8 = arith.constant 8 : index
    %c0_27 = arith.constant 0 : index
    %84 = vector.load %arg3[%c8, %c0_27] : memref<16x128xf32, #tpu.memory_space<vmem>>, vector<1x128xf32>
    %85 = vector.broadcast %83 : vector<1x128xf32> to vector<8x128xf32>
    %86 = arith.subf %82, %85 : vector<8x128xf32>
    %87 = arith.mulf %86, %86 : vector<8x128xf32>
    %cst_28 = arith.constant 9.99999984E+17 : f32
    %88 = vector.broadcast %cst_28 : f32 to vector<8x128xf32>
    %89 = arith.select %10, %87, %88 : vector<8x128xi1>, vector<8x128xf32>
    %cst_29 = arith.constant dense<0x7F800000> : vector<128xf32>
    %90 = vector.multi_reduction <minimumf>, %89, %cst_29 [0] : vector<8x128xf32> to vector<128xf32>
    %91 = vector.shape_cast %90 : vector<128xf32> to vector<1x128xf32>
    %92 = arith.mulf %91, %84 : vector<1x128xf32>
    %93 = vector.broadcast %84 : vector<1x128xf32> to vector<8x128xf32>
    %94 = arith.mulf %87, %93 : vector<8x128xf32>
    %95 = vector.broadcast %92 : vector<1x128xf32> to vector<8x128xf32>
    %96 = arith.subf %94, %95 : vector<8x128xf32>
    %97 = math.exp %96 : vector<8x128xf32>
    %cst_30 = arith.constant 0.000000e+00 : f32
    %98 = vector.broadcast %cst_30 : f32 to vector<8x128xf32>
    %99 = arith.select %10, %97, %98 : vector<8x128xi1>, vector<8x128xf32>
    %cst_31 = arith.constant dense<0.000000e+00> : vector<128xf32>
    %100 = vector.multi_reduction <add>, %99, %cst_31 [0] : vector<8x128xf32> to vector<128xf32>
    %101 = vector.shape_cast %100 : vector<128xf32> to vector<1x128xf32>
    %cst_32 = arith.constant dense<0.000000e+00> : vector<8x128xf32>
    %102 = tpu.matmul %82, %12, %cst_32 {dimension_numbers = #tpu.dot_dimension_numbers<[1], [0], [0], [1], [0, 0, 1, 1], [], []>} : vector<8x128xf32>, vector<128x128xf32>, vector<8x128xf32> -> vector<8x128xf32>
    %103 = arith.addf %11, %102 : vector<8x128xf32>
    %104 = math.tanh %103 : vector<8x128xf32>
    %c4 = arith.constant 4 : index
    %c0_33 = arith.constant 0 : index
    %105 = vector.load %arg3[%c4, %c0_33] : memref<16x128xf32, #tpu.memory_space<vmem>>, vector<1x128xf32>
    %c9 = arith.constant 9 : index
    %c0_34 = arith.constant 0 : index
    %106 = vector.load %arg3[%c9, %c0_34] : memref<16x128xf32, #tpu.memory_space<vmem>>, vector<1x128xf32>
    %107 = vector.broadcast %105 : vector<1x128xf32> to vector<8x128xf32>
    %108 = arith.subf %104, %107 : vector<8x128xf32>
    %109 = arith.mulf %108, %108 : vector<8x128xf32>
    %cst_35 = arith.constant 9.99999984E+17 : f32
    %110 = vector.broadcast %cst_35 : f32 to vector<8x128xf32>
    %111 = arith.select %10, %109, %110 : vector<8x128xi1>, vector<8x128xf32>
    %cst_36 = arith.constant dense<0x7F800000> : vector<128xf32>
    %112 = vector.multi_reduction <minimumf>, %111, %cst_36 [0] : vector<8x128xf32> to vector<128xf32>
    %113 = vector.shape_cast %112 : vector<128xf32> to vector<1x128xf32>
    %114 = arith.mulf %113, %106 : vector<1x128xf32>
    %115 = vector.broadcast %106 : vector<1x128xf32> to vector<8x128xf32>
    %116 = arith.mulf %109, %115 : vector<8x128xf32>
    %117 = vector.broadcast %114 : vector<1x128xf32> to vector<8x128xf32>
    %118 = arith.subf %116, %117 : vector<8x128xf32>
    %119 = math.exp %118 : vector<8x128xf32>
    %cst_37 = arith.constant 0.000000e+00 : f32
    %120 = vector.broadcast %cst_37 : f32 to vector<8x128xf32>
    %121 = arith.select %10, %119, %120 : vector<8x128xi1>, vector<8x128xf32>
    %cst_38 = arith.constant dense<0.000000e+00> : vector<128xf32>
    %122 = vector.multi_reduction <add>, %121, %cst_38 [0] : vector<8x128xf32> to vector<128xf32>
    %123 = vector.shape_cast %122 : vector<128xf32> to vector<1x128xf32>
    %cst_39 = arith.constant 0.000000e+00 : f32
    %124 = vector.broadcast %cst_39 : f32 to vector<6x128xf32>
    %125 = tpu.concatenate %26, %48, %70, %92, %114, %35, %57, %79, %101, %123, %124 in 0 : vector<1x128xf32>, vector<1x128xf32>, vector<1x128xf32>, vector<1x128xf32>, vector<1x128xf32>, vector<1x128xf32>, vector<1x128xf32>, vector<1x128xf32>, vector<1x128xf32>, vector<1x128xf32>, vector<6x128xf32> -> vector<16x128xf32>
    %c0_40 = arith.constant 0 : index
    %c0_41 = arith.constant 0 : index
    %c0_42 = arith.constant 0 : index
    %126 = vector.load %arg4[%c0_40, %c0_41, %c0_42] : memref<1x16x128xf32, #tpu.memory_space<vmem>>, vector<1x16x128xf32>
    %127 = vector.shape_cast %126 : vector<1x16x128xf32> to vector<16x128xf32>
    %128 = vector.shape_cast %125 : vector<16x128xf32> to vector<1x16x128xf32>
    tpu.vector_store %arg4[%c0_40, %c0_41, %c0_42], %128 {strides = array<i32>} : memref<1x16x128xf32, #tpu.memory_space<vmem>>, vector<1x16x128xf32>,
    return
  }
  func.func @transform_0(%arg0: i32) -> (i32, i32) {
    %c0_i32 = arith.constant 0 : i32
    %c0_i32_0 = arith.constant 0 : i32
    return %arg0, %c0_i32 : i32, i32
  }
  func.func @transform_1(%arg0: i32) -> (i32, i32) {
    %c0_i32 = arith.constant 0 : i32
    %c0_i32_0 = arith.constant 0 : i32
    %c0_i32_1 = arith.constant 0 : i32
    return %c0_i32, %c0_i32_0 : i32, i32
  }
  func.func @transform_2(%arg0: i32) -> (i32, i32) {
    %c0_i32 = arith.constant 0 : i32
    %c0_i32_0 = arith.constant 0 : i32
    %c0_i32_1 = arith.constant 0 : i32
    return %c0_i32, %c0_i32_0 : i32, i32
  }
  func.func @transform_3(%arg0: i32) -> (i32, i32, i32) {
    %c0_i32 = arith.constant 0 : i32
    %c0_i32_0 = arith.constant 0 : i32
    %c0_i32_1 = arith.constant 0 : i32
    return %arg0, %c0_i32, %c0_i32_0 : i32, i32, i32
  }
}

</mosaic_0001>

<bundles_post_ra>
// kernel: _forward_core.3
= control target key start
LH: loop header
LB: loop body
LE: loop exit
PB: predicated region body
PF: predicated region fallthrough
CT: control target
= control target key end

     0   :  { %v1020_v0 = vmov 0.0|0.0   ;;  %vm1021_vm0 = vmmov 0   ;;  %v1022_v4 = vmov 0.0   ;;  %v14_v31 = vlaneseq  ;;  %s1307_s1 = inlined_call_operand.vmem [shape: f32[128,128], index: 1, kind: input, shape index: {}]   ;;  %s1308_s0 = inlined_call_operand.vmem [shape: f32[8,128], index: 0, kind: input, shape index: {}]   ;;  %s1309_s2 = inlined_call_operand.vmem [shape: f32[16,128], index: 2, kind: input, shape index: {}]   ;;  %s1310_s3 = inlined_call_operand.vmem [shape: f32[1,16,128], index: 3, kind: output, shape index: {}]  }
   0x1   :  { %877 = vmatprep.subr.bf16.mxu0 %v1020_v0  ;;  %v27_v1 = vld [vmem:[%s1307_s1] sm:$0xff]  ;;  %v28_v2 = vld [vmem:[%s1307_s1 + $0x8] sm:$0xff]  ;;  %v29_v3 = vld [vmem:[%s1307_s1 + $0x10] sm:$0xff]  ;;  %734 = vmatprep.mubr.msk.f32.mxu0 %vm1021_vm0, %v1022_v4  ;;  %vm590_vm4 = vcmask 1040384   ;;  %vm592_vm5 = vcmask 1041408   ;;  %vm594_vm6 = vcmask 1042432  }
   0x2   :  { %v1055_v5 = vpack.c.bf16 %v28_v2, %v27_v1  ;;  %v30_v6 = vld [vmem:[%s1307_s1 + $0x18] sm:$0xff]  ;;  %901 = vmatprep.subr.bf16.mxu1 %v1020_v0  ;;  %769 = vmatprep.mubr.msk.f32.mxu1 %vm1021_vm0, %v1022_v4  ;;  %v31_v8 = vld [vmem:[%s1307_s1 + $0x20] sm:$0xff]  ;;  %v32_v9 = vld [vmem:[%s1307_s1 + $0x28] sm:$0xff]  ;;  %v20_v33 = vand.u32 127, %v14_v31  ;;  %v1190_v34 = vshrl.u32 %v14_v31, 7  ;;  %vm596_vm7 = vcmask 1043456  }
   0x3   :  { %v1064_v7 = vpack.c.bf16 %v30_v6, %v29_v3  ;;  %v1076_v10 = vpack.c.bf16 %v32_v9, %v31_v8  ;;  %v33_v11 = vld [vmem:[%s1307_s1 + $0x30] sm:$0xff]  ;;  %v34_v12 = vld [vmem:[%s1307_s1 + $0x38] sm:$0xff]  ;;  %v35_v14 = vld [vmem:[%s1307_s1 + $0x40] sm:$0xff]  ;;  %vm598_vm8 = vcmask 1044480   ;;  %vm600_vm9 = vcmask 1045504  }
   0x4   :  { %879 = vmatpush3.bf16.msra.mxu0 %v1055_v5  ;;  %903 = vmatpush3.bf16.msra.mxu1 %v1055_v5  ;;  %v1088_v13 = vpack.c.bf16 %v34_v12, %v33_v11  ;;  %v36_v15 = vld [vmem:[%s1307_s1 + $0x48] sm:$0xff]  ;;  %v37_v17 = vld [vmem:[%s1307_s1 + $0x50] sm:$0xff]  ;;  %v38_v18 = vld [vmem:[%s1307_s1 + $0x58] sm:$0xff]  ;;  %vm21_vm1 = vcmp.lt.s32.totalorder %v1190_v34, 2  ;;  %vm22_vm2 = vcmp.lt.s32.totalorder %v20_v33, 100  ;;  %vm602_vm10 = vcmask 1046528  }
   0x5   :  { %880 = vmatprep.subr.bf16.mxu0 %v1020_v0  ;;  %904 = vmatprep.subr.bf16.mxu1 %v1020_v0  ;;  %v1100_v16 = vpack.c.bf16 %v36_v15, %v35_v14  ;;  %v1112_v19 = vpack.c.bf16 %v38_v18, %v37_v17  ;;  %v39_v20 = vld [vmem:[%s1307_s1 + $0x60] sm:$0xff]  ;;  %v40_v21 = vld [vmem:[%s1307_s1 + $0x68] sm:$0xff]  ;;  %v41_v23 = vld [vmem:[%s1307_s1 + $0x70] sm:$0xff] }
   0x6   :  { %v1124_v22 = vpack.c.bf16 %v40_v21, %v39_v20  ;;  %v42_v24 = vld [vmem:[%s1307_s1 + $0x78] sm:$0xff]  ;;  %v1167_v26 = vld [vmem:[%s1308_s0] sm:$0xff]  ;;  %vm1196_vm3 = vmand %vm21_vm1, %vm22_vm2 }
   0x7   :  { %v1136_v25 = vpack.c.bf16 %v42_v24, %v41_v23  ;;  %v612_v32 = vld [vmem:[%s1309_s2] ss:$0 sm:$0xff]  ;;  %v613_v43 = vld [vmem:[%s1309_s2 + $0x1] ss:$0 sm:$0xff]  ;;  %v1224_v59 = vld [vmem:[%s1309_s2 + $0x6] sm:$0x1] }
   0x8   :  { %882 = vmatpush3.bf16.msra.mxu0 %v1064_v7  ;;  %906 = vmatpush3.bf16.msra.mxu1 %v1064_v7  ;;  %v116_v61 = vld [vmem:[%s1309_s2 + $0x5] sm:$0x1]  ;;  %v330_v15 = vld [vmem:[%s1309_s2 + $0x7] sm:$0x1] }
   0x9   :  { %883 = vmatprep.subr.bf16.mxu0 %v1020_v0  ;;  %907 = vmatprep.subr.bf16.mxu1 %v1020_v0 }
   0xc   :  { %885 = vmatpush3.bf16.msra.mxu0 %v1076_v10  ;;  %909 = vmatpush3.bf16.msra.mxu1 %v1076_v10 }
   0xd   :  { %886 = vmatprep.subr.bf16.mxu0 %v1020_v0  ;;  %910 = vmatprep.subr.bf16.mxu1 %v1020_v0 }
  0x10   :  { %888 = vmatpush3.bf16.msra.mxu0 %v1088_v13  ;;  %912 = vmatpush3.bf16.msra.mxu1 %v1088_v13 }
  0x11   :  { %889 = vmatprep.subr.bf16.mxu0 %v1020_v0  ;;  %913 = vmatprep.subr.bf16.mxu1 %v1020_v0 }
  0x14   :  { %891 = vmatpush3.bf16.msra.mxu0 %v1100_v16  ;;  %915 = vmatpush3.bf16.msra.mxu1 %v1100_v16 }
  0x15   :  { %892 = vmatprep.subr.bf16.mxu0 %v1020_v0  ;;  %916 = vmatprep.subr.bf16.mxu1 %v1020_v0 }
  0x18   :  { %894 = vmatpush3.bf16.msra.mxu0 %v1112_v19  ;;  %918 = vmatpush3.bf16.msra.mxu1 %v1112_v19 }
  0x19   :  { %895 = vmatprep.subr.bf16.mxu0 %v1020_v0  ;;  %919 = vmatprep.subr.bf16.mxu1 %v1020_v0 }
  0x1c   :  { %897 = vmatpush3.bf16.msra.mxu0 %v1124_v22  ;;  %921 = vmatpush3.bf16.msra.mxu1 %v1124_v22 }
  0x1d   :  { %898 = vmatprep.subr.bf16.mxu0 %v1020_v0  ;;  %922 = vmatprep.subr.bf16.mxu1 %v1020_v0 }
  0x20   :  { %900 = vmatpush3.bf16.msra.mxu0 %v1136_v25  ;;  %924 = vmatpush3.bf16.msra.mxu1 %v1136_v25 }
  0x21   :  { %925 = vmatprep.subr.bf16.mxu0 %v1020_v0  ;;  %949 = vmatprep.subr.bf16.mxu1 %v1020_v0 }
  0x23   :  { %735 = vmatmul.mubr.f32.vlgmr.msra.gmra.mrb[0].mxu0 %v1022_v4 }
  0x24   :  { %927 = vmatpush3.bf16.msra.mxu0 %v1055_v5  ;;  %804 = vmatprep.mubr.msk.f32.mxu0 %vm1021_vm0, %v1022_v4 }
  0x25   :  { %928 = vmatprep.subr.bf16.mxu0 %v1020_v0 }
  0x28   :  { %930 = vmatpush3.bf16.msra.mxu0 %v1064_v7 }
  0x29   :  { %931 = vmatprep.subr.bf16.mxu0 %v1020_v0 }
  0x2c   :  { %933 = vmatpush3.bf16.msra.mxu0 %v1076_v10 }
  0x2d   :  { %934 = vmatprep.subr.bf16.mxu0 %v1020_v0 }
  0x30   :  { %936 = vmatpush3.bf16.msra.mxu0 %v1088_v13 }
  0x31   :  { %937 = vmatprep.subr.bf16.mxu0 %v1020_v0 }
  0x34   :  { %939 = vmatpush3.bf16.msra.mxu0 %v1100_v16 }
  0x35   :  { %940 = vmatprep.subr.bf16.mxu0 %v1020_v0 }
  0x38   :  { %942 = vmatpush3.bf16.msra.mxu0 %v1112_v19 }
  0x39   :  { %943 = vmatprep.subr.bf16.mxu0 %v1020_v0 }
  0x3c   :  { %945 = vmatpush3.bf16.msra.mxu0 %v1124_v22 }
  0x3d   :  { %946 = vmatprep.subr.bf16.mxu0 %v1020_v0 }
  0x40   :  { %948 = vmatpush3.bf16.msra.mxu0 %v1136_v25 }
  0x41   :  { %973 = vmatprep.subr.bf16.mxu0 %v1020_v0 }
  0xf6   :  { %v109_v27 = vpop.f32.mrb[0].mxu0 }
  0xf7   :  { %v113_v28 = vadd.f32 %v109_v27, %v1167_v26  ;;  %v736_v29 = vpop.f32.mrb[1].mxu0 }
  0xf9   :  { %1000 = vtanh.f32 %v113_v28 }
 0x103   :  { %v1001_v30 = vpop.eup %1000 }
 0x104   :  { %770 = vmatmul.mubr.f32.vlgmr.msra.gmra.mrb[0].mxu1 %v1001_v30  ;;  %v121_v35 = vsub.f32 %v1001_v30, %v612_v32 }
 0x105   :  { %951 = vmatpush3.bf16.msra.mxu1 %v1055_v5  ;;  %839 = vmatprep.mubr.msk.f32.mxu1 %vm1021_vm0, %v1022_v4 }
 0x106   :  { %952 = vmatprep.subr.bf16.mxu1 %v1020_v0  ;;  %v1194_v39 = vmul.f32 %v121_v35, %v121_v35  ;;  %v437_v35 = vld [vmem:[%s1309_s2 + $0x8] sm:$0x1] }
 0x108   :  { %v123_v41 = vsel %vm1196_vm3, %v1194_v39, 1e+18 }
 0x109   :  { %954 = vmatpush3.bf16.msra.mxu1 %v1064_v7  ;;  %v124_v42 = vrot.slane %v123_v41, 4 }
 0x10a   :  { %955 = vmatprep.subr.bf16.mxu1 %v1020_v0 }
 0x10b   :  { %v125_v45 = vmin.f32 %v123_v41, %v124_v42  ;;  %v1263_v41 = vsub.s32 0, %v1190_v34 }
 0x10d   :  { %957 = vmatpush3.bf16.msra.mxu1 %v1076_v10  ;;  %v126_v48 = vrot.slane %v125_v45, 2  ;;  %v134_v42 = vrot.slane %v116_v61, %v1263_v41 }
 0x10e   :  { %958 = vmatprep.subr.bf16.mxu1 %v1020_v0 }
 0x10f   :  { %v127_v51 = vmin.f32 %v125_v45, %v126_v48  ;;  %v348_v45 = vrot.slane %v330_v15, %v1263_v41  ;;  %v135_v48 = vmul.f32 %v134_v42, %v1194_v39 }
 0x111   :  { %960 = vmatpush3.bf16.msra.mxu1 %v1088_v13  ;;  %v128_v54 = vrot.slane %v127_v51, 1 }
 0x112   :  { %961 = vmatprep.subr.bf16.mxu1 %v1020_v0 }
 0x113   :  { %v129_v57 = vmin.f32 %v127_v51, %v128_v54 }
 0x115   :  { %963 = vmatpush3.bf16.msra.mxu1 %v1100_v16  ;;  %v130_v62 = vmul.f32 %v129_v57, %v116_v61 }
 0x116   :  { %964 = vmatprep.subr.bf16.mxu1 %v1020_v0 }
 0x119   :  { %966 = vmatpush3.bf16.msra.mxu1 %v1112_v19 }
 0x11a   :  { %967 = vmatprep.subr.bf16.mxu1 %v1020_v0 }
 0x11d   :  { %969 = vmatpush3.bf16.msra.mxu1 %v1124_v22 }
 0x11e   :  { %970 = vmatprep.subr.bf16.mxu1 %v1020_v0 }
 0x121   :  { %972 = vmatpush3.bf16.msra.mxu1 %v1136_v25 }
 0x1d7   :  { %v216_v36 = vpop.f32.mrb[0].mxu1 }
 0x1d8   :  { %v220_v37 = vadd.f32 %v216_v36, %v1167_v26  ;;  %v771_v38 = vpop.f32.mrb[1].mxu1 }
 0x1da   :  { %1002 = vtanh.f32 %v220_v37 }
 0x1e4   :  { %v1003_v44 = vpop.eup %1002 }
 0x1e5   :  { %v228_v46 = vsub.f32 %v1003_v44, %v613_v43  ;;  %805 = vmatmul.mubr.f32.vlgmr.msra.gmra.mrb[2].mxu0 %v1003_v44  ;;  %v241_v43 = vrot.slane %v1224_v59, %v1263_v41  ;;  %v139_v44 = vrot.slane %v130_v62, %v1263_v41 }
 0x1e6   :  { %975 = vmatpush3.bf16.msra.mxu0 %v1055_v5  ;;  %874 = vmatprep.mubr.msk.f32.mxu0 %vm1021_vm0, %v1022_v4  ;;  %v614_v5 = vld [vmem:[%s1309_s2 + $0x2] ss:$0 sm:$0xff] }
 0x1e7   :  { %v1209_v47 = vmul.f32 %v228_v46, %v228_v46  ;;  %976 = vmatprep.subr.bf16.mxu0 %v1020_v0  ;;  %v140_v34 = vsub.f32 %v135_v48, %v139_v44 }
 0x1e9   :  { %v230_v49 = vsel %vm1196_vm3, %v1209_v47, 1e+18  ;;  %v141_v54 = vmul.f32 1.442695, %v140_v34 }
 0x1ea   :  { %v231_v50 = vrot.slane %v230_v49, 4  ;;  %978 = vmatpush3.bf16.msra.mxu0 %v1064_v7 }
 0x1eb   :  { %979 = vmatprep.subr.bf16.mxu0 %v1020_v0 }
 0x1ec   :  { %v232_v52 = vmin.f32 %v230_v49, %v231_v50  ;;  %v242_v50 = vmul.f32 %v241_v43, %v1209_v47 }
 0x1ee   :  { %v233_v53 = vrot.slane %v232_v52, 2  ;;  %981 = vmatpush3.bf16.msra.mxu0 %v1076_v10 }
 0x1ef   :  { %982 = vmatprep.subr.bf16.mxu0 %v1020_v0 }
 0x1f0   :  { %v234_v55 = vmin.f32 %v232_v52, %v233_v53 }
 0x1f2   :  { %v235_v56 = vrot.slane %v234_v55, 1  ;;  %984 = vmatpush3.bf16.msra.mxu0 %v1088_v13 }
 0x1f3   :  { %985 = vmatprep.subr.bf16.mxu0 %v1020_v0 }
 0x1f4   :  { %v236_v58 = vmin.f32 %v234_v55, %v235_v56 }
 0x1f6   :  { %v1227_v60 = vmul.f32 %v236_v58, %v1224_v59  ;;  %987 = vmatpush3.bf16.msra.mxu0 %v1100_v16 }
 0x1f7   :  { %988 = vmatprep.subr.bf16.mxu0 %v1020_v0 }
 0x1f8   :  { %v579_v63 = vrot.slane %v1227_v60, 7  ;;  %v246_v46 = vrot.slane %v1227_v60, %v1263_v41 }
 0x1fa   :  { %v591_v1 = vsel %vm590_vm4, %v130_v62, %v579_v63  ;;  %990 = vmatpush3.bf16.msra.mxu0 %v1112_v19  ;;  %v247_v52 = vsub.f32 %v242_v50, %v246_v46  ;;  %v455_v62 = vrot.slane %v437_v35, %v1263_v41  ;;  %v616_v63 = vld [vmem:[%s1309_s2 + $0x4] ss:$0 sm:$0xff] }
 0x1fb   :  { %991 = vmatprep.subr.bf16.mxu0 %v1020_v0 }
 0x1fc   :  { %v248_v55 = vmul.f32 1.442695, %v247_v52 }
 0x1fe   :  { %993 = vmatpush3.bf16.msra.mxu0 %v1124_v22  ;;  %v615_v22 = vld [vmem:[%s1309_s2 + $0x3] ss:$0 sm:$0xff] }
 0x1ff   :  { %994 = vmatprep.subr.bf16.mxu0 %v1020_v0 }
 0x202   :  { %996 = vmatpush3.bf16.msra.mxu0 %v1136_v25 }
 0x2b8   :  { %v323_v2 = vpop.f32.mrb[2].mxu0 }
 0x2b9   :  { %v327_v3 = vadd.f32 %v323_v2, %v1167_v26  ;;  %v806_v4 = vpop.f32.mrb[3].mxu0 }
 0x2bb   :  { %1004 = vtanh.f32 %v327_v3 }
 0x2c5   :  { %v1005_v6 = vpop.eup %1004 }
 0x2c6   :  { %v335_v7 = vsub.f32 %v1005_v6, %v614_v5  ;;  %840 = vmatmul.mubr.f32.vlgmr.msra.gmra.mrb[2].mxu1 %v1005_v6 }
 0x2c8   :  { %v336_v8 = vmul.f32 %v335_v7, %v335_v7 }
 0x2ca   :  { %v337_v9 = vsel %vm1196_vm3, %v336_v8, 1e+18  ;;  %v349_v51 = vmul.f32 %v348_v45, %v336_v8 }
 0x2cb   :  { %v338_v10 = vrot.slane %v337_v9, 4 }
 0x2cd   :  { %v339_v0 = vmin.f32 %v337_v9, %v338_v10 }
 0x2cf   :  { %v340_v11 = vrot.slane %v339_v0, 2 }
 0x2d1   :  { %v341_v12 = vmin.f32 %v339_v0, %v340_v11 }
 0x2d3   :  { %v342_v13 = vrot.slane %v341_v12, 1 }
 0x2d5   :  { %v343_v14 = vmin.f32 %v341_v12, %v342_v13 }
 0x2d7   :  { %v344_v16 = vmul.f32 %v343_v14, %v330_v15 }
 0x2d9   :  { %v582_v17 = vrot.slane %v344_v16, 6  ;;  %v353_v49 = vrot.slane %v344_v16, %v1263_v41 }
 0x2db   :  { %v593_v18 = vsel %vm592_vm5, %v591_v1, %v582_v17  ;;  %v354_v53 = vsub.f32 %v349_v51, %v353_v49 }
 0x2dd   :  { %v355_v56 = vmul.f32 1.442695, %v354_v53 }
 0x399   :  { %v430_v19 = vpop.f32.mrb[2].mxu1 }
 0x39a   :  { %v434_v20 = vadd.f32 %v430_v19, %v1167_v26  ;;  %v841_v21 = vpop.f32.mrb[3].mxu1 }
 0x39c   :  { %1006 = vtanh.f32 %v434_v20 }
 0x39d   :  { %1008 = vpow2.f32 %v141_v54 }
 0x39e   :  { %1010 = vpow2.f32 %v248_v55 }
 0x39f   :  { %1012 = vpow2.f32 %v355_v56 }
 0x3a6   :  { %v1007_v23 = vpop.eup %1006 }
 0x3a7   :  { %v442_v24 = vsub.f32 %v1007_v23, %v615_v22  ;;  %875 = vmatmul.mubr.f32.vlgmr.msra.gmra.mrb[4].mxu0 %v1007_v23  ;;  %v1009_v39 = vpop.eup %1008  ;;  %v544_v23 = vld [vmem:[%s1309_s2 + $0x9] sm:$0x1] }
 0x3a8   :  { %v1011_v60 = vpop.eup %1010  ;;  %v143_v47 = vsel %vm1196_vm3, %v1009_v39, 0.0 }
 0x3a9   :  { %v443_v25 = vmul.f32 %v442_v24, %v442_v24  ;;  %v1013_v61 = vpop.eup %1012  ;;  %v250_v1 = vsel %vm1196_vm3, %v1011_v60, 0.0  ;;  %v144_v4 = vrot.slane %v143_v47, 4 }
 0x3aa   :  { %v251_v6 = vrot.slane %v250_v1, 4 }
 0x3ab   :  { %v444_v27 = vsel %vm1196_vm3, %v443_v25, 1e+18  ;;  %v456_v7 = vmul.f32 %v455_v62, %v443_v25  ;;  %v145_v0 = vadd.f32 %v144_v4, %v143_v47 }
 0x3ac   :  { %v445_v28 = vrot.slane %v444_v27, 4  ;;  %v252_v12 = vadd.f32 %v251_v6, %v250_v1 }
 0x3ad   :  { %v146_v17 = vrot.slane %v145_v0, 2 }
 0x3ae   :  { %v446_v29 = vmin.f32 %v444_v27, %v445_v28 }
 0x3af   :  { %v147_v22 = vadd.f32 %v146_v17, %v145_v0 }
 0x3b0   :  { %v447_v30 = vrot.slane %v446_v29, 2 }
 0x3b2   :  { %v448_v31 = vmin.f32 %v446_v29, %v447_v30  ;;  %v562_v29 = vrot.slane %v544_v23, %v1263_v41  ;;  %v148_v30 = vrot.slane %v147_v22, 1 }
 0x3b4   :  { %v449_v32 = vrot.slane %v448_v31, 1  ;;  %v149_v42 = vadd.f32 %v148_v30, %v147_v22 }
 0x3b6   :  { %v450_v33 = vmin.f32 %v448_v31, %v449_v32 }
 0x3b8   :  { %v451_v36 = vmul.f32 %v450_v33, %v437_v35 }
 0x3ba   :  { %v585_v37 = vrot.slane %v451_v36, 5  ;;  %v460_v3 = vrot.slane %v451_v36, %v1263_v41 }
 0x3bc   :  { %v1260_v38 = vsel %vm594_vm6, %v593_v18, %v585_v37  ;;  %v461_v10 = vsub.f32 %v456_v7, %v460_v3  ;;  %v253_v18 = vrot.slane %v252_v12, 2 }
 0x3be   :  { %v462_v15 = vmul.f32 1.442695, %v461_v10  ;;  %v254_v24 = vadd.f32 %v253_v18, %v252_v12 }
 0x3c0   :  { %v255_v31 = vrot.slane %v254_v24, 1 }
 0x3c2   :  { %v256_v44 = vadd.f32 %v255_v31, %v254_v24 }
 0x47a   :  { %v537_v57 = vpop.f32.mrb[4].mxu0 }
 0x47b   :  { %v541_v58 = vadd.f32 %v537_v57, %v1167_v26  ;;  %v876_v59 = vpop.f32.mrb[5].mxu0  ;;  %v357_v26 = vsel %vm1196_vm3, %v1013_v61, 0.0 }
 0x47c   :  { %v358_v8 = vrot.slane %v357_v26, 4 }
 0x47d   :  { %1014 = vtanh.f32 %v541_v58 }
 0x47e   :  { %v359_v14 = vadd.f32 %v358_v8, %v357_v26  ;;  %1016 = vpow2.f32 %v462_v15 }
 0x480   :  { %v360_v20 = vrot.slane %v359_v14, 2 }
 0x482   :  { %v361_v27 = vadd.f32 %v360_v20, %v359_v14 }
 0x484   :  { %v362_v33 = vrot.slane %v361_v27, 1 }
 0x486   :  { %v363_v48 = vadd.f32 %v362_v33, %v361_v27 }
 0x487   :  { %v1015_v2 = vpop.eup %1014 }
 0x488   :  { %v549_v5 = vsub.f32 %v1015_v2, %v616_v63  ;;  %v1017_v43 = vpop.eup %1016 }
 0x489   :  { %v464_v51 = vsel %vm1196_vm3, %v1017_v43, 0.0 }
 0x48a   :  { %v550_v9 = vmul.f32 %v549_v5, %v549_v5 }
 0x48c   :  { %v551_v11 = vsel %vm1196_vm3, %v550_v9, 1e+18  ;;  %v563_v35 = vmul.f32 %v562_v29, %v550_v9 }
 0x48d   :  { %v552_v13 = vrot.slane %v551_v11, 4 }
 0x48f   :  { %v553_v16 = vmin.f32 %v551_v11, %v552_v13 }
 0x491   :  { %v554_v19 = vrot.slane %v553_v16, 2 }
 0x493   :  { %v555_v21 = vmin.f32 %v553_v16, %v554_v19 }
 0x495   :  { %v556_v25 = vrot.slane %v555_v21, 1 }
 0x497   :  { %v557_v28 = vmin.f32 %v555_v21, %v556_v25 }
 0x499   :  { %v558_v32 = vmul.f32 %v557_v28, %v544_v23 }
 0x49b   :  { %v567_v36 = vrot.slane %v558_v32, %v1263_v41  ;;  %v588_v37 = vrot.slane %v558_v32, 4  ;;  %v465_v41 = vrot.slane %v464_v51, 4 }
 0x49d   :  { %v568_v45 = vsub.f32 %v563_v35, %v567_v36  ;;  %v597_v46 = vsel %vm596_vm7, %v1260_v38, %v588_v37  ;;  %v466_v53 = vadd.f32 %v465_v41, %v464_v51 }
 0x49e   :  { %v599_v49 = vsel %vm598_vm8, %v597_v46, %v149_v42 }
 0x49f   :  { %v569_v50 = vmul.f32 1.442695, %v568_v45  ;;  %v601_v34 = vsel %vm600_vm9, %v599_v49, %v256_v44  ;;  %v467_v55 = vrot.slane %v466_v53, 2 }
 0x4a0   :  { %v603_v52 = vsel %vm602_vm10, %v601_v34, %v363_v48 }
 0x4a1   :  { %1018 = vpow2.f32 %v569_v50  ;;  %606 = vst [vmem:[%s1310_s3] sm:$0xff] %v603_v52  ;;  %v468_v57 = vadd.f32 %v467_v55, %v466_v53 }
 0x4a3   :  { %v469_v39 = vrot.slane %v468_v57, 1 }
 0x4a5   :  { %v470_v47 = vadd.f32 %v469_v39, %v468_v57 }
 0x4ab   :  { %v1019_v54 = vpop.eup %1018 }
 0x4ac   :  { %v571_v38 = vsel %vm1196_vm3, %v1019_v54, 0.0 }
 0x4ad   :  { %v572_v56 = vrot.slane %v571_v38, 4 }
 0x4af   :  { %v573_v58 = vadd.f32 %v572_v56, %v571_v38 }
 0x4b1   :  { %v574_v59 = vrot.slane %v573_v58, 2 }
 0x4b3   :  { %v575_v60 = vadd.f32 %v574_v59, %v573_v58 }
 0x4b5   :  { %v576_v61 = vrot.slane %v575_v60, 1 }
 0x4b7   :  { %v577_v62 = vadd.f32 %v576_v61, %v575_v60 }
 0x4b9   :  { %v604_v63 = vsel %vm590_vm4, %v470_v47, %v577_v62 }
 0x4ba   :  { %v605_v1 = vsel %vm592_vm5, %v604_v63, 0.0 }
 0x4bb   :  { %607 = vst [vmem:[%s1310_s3 + $0x8] sm:$0xff] %v605_v1 }

// kernel: _forward_core.2
= control target key start
LH: loop header
LB: loop body
LE: loop exit
PB: predicated region body
PF: predicated region fallthrough
CT: control target
= control target key end

     0   :  { %14 = vsyncpa [#allocation3], 0  ;;  %s2271_s0 = inlined_call_operand.vmem [shape: f32[8,784], index: 0, kind: input, shape index: {}]   ;;  %s2272_s1 = inlined_call_operand.hbm [shape: bf16[784,128], index: 1, kind: input, shape index: {}]   ;;  %s2273_s2 = inlined_call_operand.vmem [shape: f32[1,128], index: 2, kind: input, shape index: {}]   ;;  %s2274_s3 = inlined_call_operand.hbm [shape: f32[128,128], index: 3, kind: input, shape index: {}]   ;;  %s2275_s4 = inlined_call_operand.hbm [shape: f32[128,128], index: 4, kind: input, shape index: {}]   ;;  %s2276_s5 = inlined_call_operand.vmem [shape: f32[1,128], index: 5, kind: input, shape index: {}]   ;;  %s2277_s6 = inlined_call_operand.vmem [shape: f32[8,128], index: 6, kind: output, shape index: {0}]   ;;  %s2278_s7 = inlined_call_operand.vmem [shape: f32[8,128], index: 7, kind: output, shape index: {1}]   ;;  %s2279_s8 = inlined_call_operand.vmem [shape: f32[1,16,128], index: 8, kind: output, shape index: {2}]  }
   0x1   :  { %15 = vsyncpa [#allocation5], 0  ;;  %s1962_s27 = smov [#allocation4]   ;;  %s1892_s9 = scalar_lea.hbm %s2274_s3, 2048 }
   0x2   :  { %s37_s28 = sshll.u32 %s1962_s27, 4  ;;  %p1893_p0 = scmp.ne.s32.totalorder %s2274_s3, %s1892_s9  ;;  %s38_s28 = int_to_ptr.vmem [resolvable:$true] %s37_s28 }
   0x3   :  { %p1896_p1 = scmp.lt.u32.totalorder %s1892_s9, %s2274_s3 }
   0x5   :  { %p1898_p2 = pnand %p1896_p1, %p1893_p0 }
   0x7   :  { %1901 = shalt.err (!%p1898_p2)
}
   0x8   :  { %s1902_s14 = scalar_lea.vmem %s38_s28, 2048  ;;  %p1907_p4 = scmp.lt.s32.totalorder %s38_s28, %s38_s28 }
   0x9   :  { %p1903_p3 = scmp.ne.s32.totalorder %s38_s28, %s1902_s14  ;;  %p1908_p5 = scmp.lt.s32.totalorder %s1902_s14, %s1902_s14 }
   0xb   :  { %p1909_p6 = por %p1908_p5, %p1907_p4 }
   0xd   :  { %p1910_p7 = pnand %p1909_p6, %p1903_p3 }
   0xf   :  { %1913 = shalt.err (!%p1910_p7)
}
  0x10   :  { %s1963_s15 = smov 128   ;;  %s1964_s16 = smov 8  }
  0x11   :  { %43 = dma.hbm_to_vmem [thread:$0]  %s2274_s3, 2048, %s38_s28, [#allocation5], %s1963_s15, %s1963_s15, %s1964_s16  }
  0x12   :  { %s1965_s19 = smov [#allocation2]   ;;  %s1914_s23 = scalar_lea.hbm %s2272_s1, 6272 }
  0x13   :  { %s23_s20 = sshll.u32 %s1965_s19, 4  ;;  %p1915_p8 = scmp.ne.s32.totalorder %s2272_s1, %s1914_s23  ;;  %s24_s20 = int_to_ptr.vmem [resolvable:$true] %s23_s20 }
  0x14   :  { %p1918_p9 = scmp.lt.u32.totalorder %s1914_s23, %s2272_s1 }
  0x16   :  { %p1920_p10 = pnand %p1918_p9, %p1915_p8 }
  0x18   :  { %1923 = shalt.err (!%p1920_p10)
}
  0x19   :  { %s1924_s29 = scalar_lea.vmem %s24_s20, 6272  ;;  %p1929_p12 = scmp.lt.s32.totalorder %s24_s20, %s24_s20 }
  0x1a   :  { %p1925_p11 = scmp.ne.s32.totalorder %s24_s20, %s1924_s29  ;;  %p1930_p13 = scmp.lt.s32.totalorder %s1924_s29, %s1924_s29 }
  0x1c   :  { %p1931_p0 = por %p1930_p13, %p1929_p12 }
  0x1e   :  { %p1932_p1 = pnand %p1931_p0, %p1925_p11 }
  0x20   :  { %1935 = shalt.err (!%p1932_p1)
}
  0x21   :  { %s1966_s3 = smov 64   ;;  %s1967_s28 = smov 4  }
  0x22   :  { %29 = dma.hbm_to_vmem [thread:$0]  %s2272_s1, 6272, %s24_s20, [#allocation3], %s1966_s3, %s1966_s3, %s1967_s28  }
  0x23   :  { %s1968_s10 = smov [#allocation6]   ;;  %s1936_s14 = scalar_lea.hbm %s2275_s4, 2048 }
  0x24   :  { %s49_s11 = sshll.u32 %s1968_s10, 4  ;;  %p1937_p2 = scmp.ne.s32.totalorder %s2275_s4, %s1936_s14  ;;  %s50_s11 = int_to_ptr.vmem [resolvable:$true] %s49_s11 }
  0x25   :  { %p1940_p3 = scmp.lt.u32.totalorder %s1936_s14, %s2275_s4 }
  0x27   :  { %p1942_p4 = pnand %p1940_p3, %p1937_p2 }
  0x29   :  { %1945 = shalt.err (!%p1942_p4)
}
  0x2a   :  { %s1946_s22 = scalar_lea.vmem %s50_s11, 2048  ;;  %p1951_p6 = scmp.lt.s32.totalorder %s50_s11, %s50_s11 }
  0x2b   :  { %p1947_p5 = scmp.ne.s32.totalorder %s50_s11, %s1946_s22  ;;  %p1952_p7 = scmp.lt.s32.totalorder %s1946_s22, %s1946_s22 }
  0x2d   :  { %p1953_p8 = por %p1952_p7, %p1951_p6 }
  0x2f   :  { %p1954_p9 = pnand %p1953_p8, %p1947_p5 }
  0x31   :  { %1957 = shalt.err (!%p1954_p9)
}
  0x32   :  { %55 = dma.hbm_to_vmem [thread:$0]  %s2275_s4, 2048, %s50_s11, [#allocation5], %s1963_s15, %s1963_s15, %s1964_s16  }
  0x33   :  { %1958 = dma.done.wait [#allocation3], 6272  }
  0x34   :  { %1959 = vsyncadd [#allocation3], 4294961024 }
  0x35   :  { %1960 = dma.done.wait [#allocation5], 4096  }
  0x36   :  { %1961 = vsyncadd [#allocation5], 4294963200  ;;  %v1829_v0 = vld [vmem:[#allocation2 + $0x40] sm:$0xff]   ;;  %v1833_v4 = vld [vmem:[#allocation2 + $0x48] sm:$0xff]   ;;  %v1969_v41 = vmov 0.0   ;;  %vm1970_vm0 = vmmov 0  }
  0x37   :  { %v1830_v1 = vld [vmem:[#allocation2 + $0xc0] sm:$0xff]   ;;  %1289 = vmatprep.subr.bf16.mxu0 %v1829_v0  ;;  %v1834_v5 = vld [vmem:[#allocation2 + $0xc8] sm:$0xff]   ;;  %v1837_v8 = vld [vmem:[#allocation2 + $0x50] sm:$0xff]   ;;  %v1971_v46 = vmov 0.0|0.0   ;;  %vm489_vm1 = vcmask 130048   ;;  %vm1204_vm3 = vcmask 1040384  }
  0x38   :  { %v1831_v2 = vld [vmem:[#allocation2] sm:$0xff]   ;;  %1311 = vmatprep.subr.bf16.mxu1 %v1830_v1  ;;  %v1835_v6 = vld [vmem:[#allocation2 + $0x8] sm:$0xff]   ;;  %v1838_v9 = vld [vmem:[#allocation2 + $0xd0] sm:$0xff]   ;;  %vm1206_vm4 = vcmask 1041408   ;;  %vm1208_vm5 = vcmask 1042432   ;;  %vm1210_vm6 = vcmask 1043456  }
  0x39   :  { %v1832_v3 = vld [vmem:[#allocation2 + $0x80] sm:$0xff]   ;;  %1290 = vmatpush3.bf16.msra.mxu0 %v1831_v2  ;;  %v1836_v7 = vld [vmem:[#allocation2 + $0x88] sm:$0xff]   ;;  %v1839_v10 = vld [vmem:[#allocation2 + $0x10] sm:$0xff]   ;;  %vm1212_vm7 = vcmask 1044480   ;;  %vm1214_vm8 = vcmask 1045504   ;;  %vm1216_vm9 = vcmask 1046528  }
  0x3a   :  { %1312 = vmatpush3.bf16.msra.mxu1 %v1832_v3  ;;  %1291 = vmatprep.subr.bf16.mxu0 %v1833_v4  ;;  %v1840_v11 = vld [vmem:[#allocation2 + $0x90] sm:$0xff]   ;;  %v1841_v12 = vld [vmem:[#allocation2 + $0x58] sm:$0xff]   ;;  %v1845_v16 = vld [vmem:[#allocation2 + $0x60] sm:$0xff]  }
  0x3b   :  { %1313 = vmatprep.subr.bf16.mxu1 %v1834_v5  ;;  %v1842_v13 = vld [vmem:[#allocation2 + $0xd8] sm:$0xff]   ;;  %v1846_v17 = vld [vmem:[#allocation2 + $0xe0] sm:$0xff]   ;;  %v1849_v20 = vld [vmem:[#allocation2 + $0x68] sm:$0xff]  }
  0x3c   :  { %v1843_v14 = vld [vmem:[#allocation2 + $0x18] sm:$0xff]   ;;  %v1847_v18 = vld [vmem:[#allocation2 + $0x20] sm:$0xff]   ;;  %v1850_v21 = vld [vmem:[#allocation2 + $0xe8] sm:$0xff]  }
  0x3d   :  { %1292 = vmatpush3.bf16.msra.mxu0 %v1835_v6  ;;  %v1844_v15 = vld [vmem:[#allocation2 + $0x98] sm:$0xff]   ;;  %v1848_v19 = vld [vmem:[#allocation2 + $0xa0] sm:$0xff]   ;;  %v1851_v22 = vld [vmem:[#allocation2 + $0x28] sm:$0xff]  }
  0x3e   :  { %1314 = vmatpush3.bf16.msra.mxu1 %v1836_v7  ;;  %1293 = vmatprep.subr.bf16.mxu0 %v1837_v8  ;;  %v1852_v23 = vld [vmem:[#allocation2 + $0xa8] sm:$0xff]   ;;  %v1853_v24 = vld [vmem:[#allocation2 + $0x70] sm:$0xff]   ;;  %v1857_v28 = vld [vmem:[#allocation2 + $0x78] sm:$0xff]  }
  0x3f   :  { %1315 = vmatprep.subr.bf16.mxu1 %v1838_v9  ;;  %v1854_v25 = vld [vmem:[#allocation2 + $0xf0] sm:$0xff]   ;;  %v1858_v29 = vld [vmem:[#allocation2 + $0xf8] sm:$0xff]   ;;  %v77_v32 = vld [vmem:[%s2271_s0 + $0x8] sm:$0xff] }
  0x40   :  { %v1855_v26 = vld [vmem:[#allocation2 + $0x30] sm:$0xff]   ;;  %v1859_v30 = vld [vmem:[#allocation2 + $0x38] sm:$0xff]   ;;  %v76_v34 = vld [vmem:[%s2271_s0] sm:$0xff]  ;;  %v84_v35 = vpack.c.bf16 %v77_v32, %v77_v32 }
  0x41   :  { %1294 = vmatpush3.bf16.msra.mxu0 %v1839_v10  ;;  %v1856_v27 = vld [vmem:[#allocation2 + $0xb0] sm:$0xff]   ;;  %v1860_v31 = vld [vmem:[#allocation2 + $0xb8] sm:$0xff]   ;;  %v83_v37 = vpack.c.bf16 %v76_v34, %v76_v34  ;;  %v1861_v40 = vld [vmem:[#allocation2 + $0x140] sm:$0xff]  }
  0x42   :  { %1316 = vmatpush3.bf16.msra.mxu1 %v1840_v11  ;;  %1295 = vmatprep.subr.bf16.mxu0 %v1841_v12  ;;  %v79_v33 = vld [vmem:[%s2271_s0 + $0x18] sm:$0xff]  ;;  %v78_v38 = vld [vmem:[%s2271_s0 + $0x10] sm:$0xff]  ;;  %v1862_v42 = vld [vmem:[#allocation2 + $0x100] sm:$0xff]  }
  0x43   :  { %1317 = vmatprep.subr.bf16.mxu1 %v1842_v13  ;;  %v86_v36 = vpack.c.bf16 %v79_v33, %v79_v33  ;;  %v85_v39 = vpack.c.bf16 %v78_v38, %v78_v38  ;;  %525 = vmatprep.mubr.bf16.mxu0 %v84_v35  ;;  %v1863_v43 = vld [vmem:[#allocation2 + $0x180] sm:$0xff]   ;;  %v1864_v44 = vld [vmem:[#allocation2 + $0x148] sm:$0xff]   ;;  %v1866_v47 = vld [vmem:[#allocation2 + $0x150] sm:$0xff]  }
  0x44   :  { %v1865_v45 = vld [vmem:[#allocation2 + $0x108] sm:$0xff]   ;;  %v82_v48 = vld [vmem:[%s2271_s0 + $0x30] sm:$0xff]  ;;  %v656_v54 = vld [vmem:[#allocation4 + $0x10] sm:$0xff] }
  0x45   :  { %1296 = vmatpush3.bf16.msra.mxu0 %v1843_v14  ;;  %565 = vmatprep.mubr.bf16.mxu1 %v86_v36  ;;  %v654_v49 = vld [vmem:[#allocation4] sm:$0xff]  ;;  %v89_v50 = vpack.c.bf16 %v82_v48, %v82_v48  ;;  %v655_v51 = vld [vmem:[#allocation4 + $0x8] sm:$0xff]  ;;  %v657_v55 = vld [vmem:[#allocation4 + $0x18] sm:$0xff] }
  0x46   :  { %1318 = vmatpush3.bf16.msra.mxu1 %v1844_v15  ;;  %1297 = vmatprep.subr.bf16.mxu0 %v1845_v16  ;;  %v2078_v52 = vpack.c.bf16 %v655_v51, %v654_v49  ;;  %v1867_v53 = vld [vmem:[#allocation2 + $0x110] sm:$0xff]   ;;  %v1868_v56 = vld [vmem:[#allocation2 + $0x158] sm:$0xff]   ;;  %v2081_v57 = vpack.c.bf16 %v657_v55, %v656_v54  ;;  %v658_v59 = vld [vmem:[#allocation4 + $0x20] sm:$0xff] }
  0x47   :  { %1319 = vmatprep.subr.bf16.mxu1 %v1846_v17  ;;  %v1869_v58 = vld [vmem:[#allocation2 + $0x118] sm:$0xff]   ;;  %v659_v60 = vld [vmem:[#allocation4 + $0x28] sm:$0xff]  ;;  %v1870_v61 = vld [vmem:[#allocation2 + $0x160] sm:$0xff]  }
  0x48   :  { %v2087_v62 = vpack.c.bf16 %v659_v60, %v658_v59  ;;  %v1871_v63 = vld [vmem:[#allocation2 + $0x120] sm:$0xff]   ;;  %v660_v0 = vld [vmem:[#allocation4 + $0x30] sm:$0xff]  ;;  %v1872_v2 = vld [vmem:[#allocation2 + $0x168] sm:$0xff]  }
  0x49   :  { %1298 = vmatpush3.bf16.msra.mxu0 %v1847_v18  ;;  %v661_v1 = vld [vmem:[#allocation4 + $0x38] sm:$0xff]  ;;  %v1873_v4 = vld [vmem:[#allocation2 + $0x128] sm:$0xff]   ;;  %v663_v6 = vld [vmem:[#allocation4 + $0x48] sm:$0xff] }
  0x4a   :  { %1320 = vmatpush3.bf16.msra.mxu1 %v1848_v19  ;;  %1299 = vmatprep.subr.bf16.mxu0 %v1849_v20  ;;  %v2091_v3 = vpack.c.bf16 %v661_v1, %v660_v0  ;;  %v662_v5 = vld [vmem:[#allocation4 + $0x40] sm:$0xff]  ;;  %v1874_v8 = vld [vmem:[#allocation2 + $0x170] sm:$0xff]   ;;  %v664_v12 = vld [vmem:[#allocation4 + $0x50] sm:$0xff] }
  0x4b   :  { %1321 = vmatprep.subr.bf16.mxu1 %v1850_v21  ;;  %v81_v7 = vld [vmem:[%s2271_s0 + $0x28] sm:$0xff]  ;;  %v2098_v10 = vpack.c.bf16 %v663_v6, %v662_v5  ;;  %v1875_v11 = vld [vmem:[#allocation2 + $0x130] sm:$0xff]   ;;  %v665_v13 = vld [vmem:[#allocation4 + $0x58] sm:$0xff] }
  0x4c   :  { %v88_v9 = vpack.c.bf16 %v81_v7, %v81_v7  ;;  %v1876_v14 = vld [vmem:[#allocation2 + $0x178] sm:$0xff]   ;;  %v2102_v15 = vpack.c.bf16 %v665_v13, %v664_v12  ;;  %v80_v17 = vld [vmem:[%s2271_s0 + $0x20] sm:$0xff]  ;;  %v666_v18 = vld [vmem:[#allocation4 + $0x60] sm:$0xff] }
  0x4d   :  { %1300 = vmatpush3.bf16.msra.mxu0 %v1851_v22  ;;  %v1877_v16 = vld [vmem:[#allocation2 + $0x138] sm:$0xff]   ;;  %v667_v19 = vld [vmem:[#allocation4 + $0x68] sm:$0xff]  ;;  %v87_v20 = vpack.c.bf16 %v80_v17, %v80_v17 }
  0x4e   :  { %1322 = vmatpush3.bf16.msra.mxu1 %v1852_v23  ;;  %1301 = vmatprep.subr.bf16.mxu0 %v1853_v24  ;;  %v2109_v21 = vpack.c.bf16 %v667_v19, %v666_v18  ;;  %v668_v22 = vld [vmem:[#allocation4 + $0x70] sm:$0xff]  ;;  %v669_v23 = vld [vmem:[#allocation4 + $0x78] sm:$0xff] }
  0x4f   :  { %1323 = vmatprep.subr.bf16.mxu1 %v1854_v25  ;;  %v2114_v24 = vpack.c.bf16 %v669_v23, %v668_v22 }
  0x51   :  { %1302 = vmatpush3.bf16.msra.mxu0 %v1855_v26 }
  0x52   :  { %1324 = vmatpush3.bf16.msra.mxu1 %v1856_v27  ;;  %1303 = vmatprep.subr.bf16.mxu0 %v1857_v28  ;;  %v1237_v27 = vld [vmem:[%s2273_s2] ss:$0 sm:$0xff] }
  0x53   :  { %1325 = vmatprep.subr.bf16.mxu1 %v1858_v29 }
  0x55   :  { %1304 = vmatpush3.bf16.msra.mxu0 %v1859_v30 }
  0x56   :  { %1326 = vmatpush3.bf16.msra.mxu1 %v1860_v31  ;;  %1333 = vmatprep.subr.bf16.mxu0 %v1861_v40 }
  0x57   :  { %1459 = vmatprep.subr.bf16.mxu1 %v1969_v41 }
  0x58   :  { %526 = vmatmul.mubr.bf16.vlgmr.msra.gmra.mrb[0].mxu0 %v83_v37 }
  0x59   :  { %566 = vmatmul.mubr.bf16.vlgmr.msra.gmra.mrb[0].mxu1 %v85_v39  ;;  %1334 = vmatpush3.bf16.msra.mxu0 %v1862_v42 }
  0x5a   :  { %1461 = vmatprep.mubr.msk.bf16.mxu1 %vm1970_vm0, %v1969_v41  ;;  %1460 = vmatpush3.bf16.msra.mxu1 %v1863_v43 }
  0x5b   :  { %1335 = vmatprep.subr.bf16.mxu0 %v1864_v44  ;;  %1675 = vmatprep.subr.bf16.mxu1 %v1971_v46 }
  0x5c   :  { %605 = vmatprep.mubr.bf16.mxu0 %v88_v9 }
  0x5d   :  { %1336 = vmatpush3.bf16.msra.mxu0 %v1865_v45 }
  0x5e   :  { %1337 = vmatprep.subr.bf16.mxu0 %v1866_v47 }
  0x61   :  { %1462 = vmatmul.mubr.msk.bf16.vlgmr.msra.gmra.mrb[4].mxu1 %vm489_vm1, %v89_v50  ;;  %1338 = vmatpush3.bf16.msra.mxu0 %v1867_v53 }
  0x62   :  { %1677 = vmatpush3.bf16.msra.mxu1 %v2078_v52  ;;  %1497 = vmatprep.mubr.msk.f32.mxu1 %vm1970_vm0, %v1969_v41 }
  0x63   :  { %1678 = vmatprep.subr.bf16.mxu1 %v1971_v46  ;;  %1339 = vmatprep.subr.bf16.mxu0 %v1868_v56  ;;  %v68_v56 = vlaneseq }
  0x65   :  { %1340 = vmatpush3.bf16.msra.mxu0 %v1869_v58  ;;  %v69_v58 = vshrl.u32 %v68_v56, 7  ;;  %v1110_v56 = vld [vmem:[#allocation6 + $0x50] sm:$0xff] }
  0x66   :  { %1680 = vmatpush3.bf16.msra.mxu1 %v2081_v57  ;;  %1341 = vmatprep.subr.bf16.mxu0 %v1870_v61 }
  0x67   :  { %1681 = vmatprep.subr.bf16.mxu1 %v1971_v46  ;;  %vm73_vm2 = vcmp.lt.s32.totalorder %v69_v58, 2  ;;  %v1111_v58 = vld [vmem:[#allocation6 + $0x58] sm:$0xff] }
  0x68   :  { %v2188_v59 = vsel %vm73_vm2, 1.0, %v1969_v41 }
  0x69   :  { %1342 = vmatpush3.bf16.msra.mxu0 %v1871_v63 }
  0x6a   :  { %1683 = vmatpush3.bf16.msra.mxu1 %v2087_v62  ;;  %1343 = vmatprep.subr.bf16.mxu0 %v1872_v2 }
  0x6b   :  { %1684 = vmatprep.subr.bf16.mxu1 %v1971_v46 }
  0x6d   :  { %1344 = vmatpush3.bf16.msra.mxu0 %v1873_v4 }
  0x6e   :  { %1686 = vmatpush3.bf16.msra.mxu1 %v2091_v3  ;;  %1345 = vmatprep.subr.bf16.mxu0 %v1874_v8 }
  0x6f   :  { %1687 = vmatprep.subr.bf16.mxu1 %v1971_v46 }
  0x71   :  { %1346 = vmatpush3.bf16.msra.mxu0 %v1875_v11 }
  0x72   :  { %1689 = vmatpush3.bf16.msra.mxu1 %v2098_v10  ;;  %1347 = vmatprep.subr.bf16.mxu0 %v1876_v14 }
  0x73   :  { %1690 = vmatprep.subr.bf16.mxu1 %v1971_v46 }
  0x75   :  { %1348 = vmatpush3.bf16.msra.mxu0 %v1877_v16 }
  0x76   :  { %1692 = vmatpush3.bf16.msra.mxu1 %v2102_v15  ;;  %1699 = vmatprep.subr.bf16.mxu0 %v1971_v46 }
  0x77   :  { %1693 = vmatprep.subr.bf16.mxu1 %v1971_v46 }
  0x78   :  { %606 = vmatmul.mubr.bf16.vlgmr.msra.gmra.mrb[4].mxu0 %v87_v20 }
  0x79   :  { %1701 = vmatpush3.bf16.msra.mxu0 %v2078_v52  ;;  %1532 = vmatprep.mubr.msk.f32.mxu0 %vm1970_vm0, %v1969_v41 }
  0x7a   :  { %1695 = vmatpush3.bf16.msra.mxu1 %v2109_v21  ;;  %1702 = vmatprep.subr.bf16.mxu0 %v1971_v46 }
  0x7b   :  { %1696 = vmatprep.subr.bf16.mxu1 %v1971_v46 }
  0x7d   :  { %1704 = vmatpush3.bf16.msra.mxu0 %v2081_v57 }
  0x7e   :  { %1698 = vmatpush3.bf16.msra.mxu1 %v2114_v24  ;;  %1705 = vmatprep.subr.bf16.mxu0 %v1971_v46 }
  0x7f   :  { %1723 = vmatprep.subr.bf16.mxu1 %v1971_v46 }
  0x81   :  { %1498 = vmatmul.mubr.f32.vlgmr.msra.gmra.mrb[8].mxu1 %v1969_v41  ;;  %1707 = vmatpush3.bf16.msra.mxu0 %v2087_v62 }
  0x82   :  { %1725 = vmatpush3.bf16.msra.mxu1 %v2078_v52  ;;  %1567 = vmatprep.mubr.msk.f32.mxu1 %vm1970_vm0, %v1969_v41 }
  0x83   :  { %1726 = vmatprep.subr.bf16.mxu1 %v1971_v46  ;;  %1708 = vmatprep.subr.bf16.mxu0 %v1971_v46 }
  0x85   :  { %1710 = vmatpush3.bf16.msra.mxu0 %v2091_v3 }
  0x86   :  { %1728 = vmatpush3.bf16.msra.mxu1 %v2081_v57  ;;  %1711 = vmatprep.subr.bf16.mxu0 %v1971_v46 }
  0x87   :  { %1729 = vmatprep.subr.bf16.mxu1 %v1971_v46 }
  0x89   :  { %1713 = vmatpush3.bf16.msra.mxu0 %v2098_v10 }
  0x8a   :  { %1731 = vmatpush3.bf16.msra.mxu1 %v2087_v62  ;;  %1714 = vmatprep.subr.bf16.mxu0 %v1971_v46 }
  0x8b   :  { %1732 = vmatprep.subr.bf16.mxu1 %v1971_v46 }
  0x8d   :  { %1716 = vmatpush3.bf16.msra.mxu0 %v2102_v15 }
  0x8e   :  { %1734 = vmatpush3.bf16.msra.mxu1 %v2091_v3  ;;  %1717 = vmatprep.subr.bf16.mxu0 %v1971_v46 }
  0x8f   :  { %1735 = vmatprep.subr.bf16.mxu1 %v1971_v46 }
  0x91   :  { %1719 = vmatpush3.bf16.msra.mxu0 %v2109_v21 }
  0x92   :  { %1737 = vmatpush3.bf16.msra.mxu1 %v2098_v10  ;;  %1720 = vmatprep.subr.bf16.mxu0 %v1971_v46 }
  0x93   :  { %1738 = vmatprep.subr.bf16.mxu1 %v1971_v46 }
  0x95   :  { %1722 = vmatpush3.bf16.msra.mxu0 %v2114_v24 }
  0x96   :  { %1740 = vmatpush3.bf16.msra.mxu1 %v2102_v15  ;;  %1747 = vmatprep.subr.bf16.mxu0 %v1971_v46 }
  0x97   :  { %1741 = vmatprep.subr.bf16.mxu1 %v1971_v46 }
  0x9a   :  { %1743 = vmatpush3.bf16.msra.mxu1 %v2109_v21 }
  0x9b   :  { %1744 = vmatprep.subr.bf16.mxu1 %v1971_v46 }
  0x9e   :  { %1746 = vmatpush3.bf16.msra.mxu1 %v2114_v24 }
  0x9f   :  { %1771 = vmatprep.subr.bf16.mxu1 %v1971_v46 }
 0x12b   :  { %v1305_v25 = vpop.f32.mrb[0].mxu0 }
 0x12c   :  { %v1327_v26 = vpop.f32.mrb[0].mxu1  ;;  %v1306_v28 = vpop.f32.mrb[1].mxu0 }
 0x12d   :  { %v1328_v29 = vpop.f32.mrb[1].mxu1  ;;  %v1307_v30 = vadd.f32 %v1306_v28, %v1305_v25  ;;  %v1308_v32 = vpop.f32.mrb[2].mxu0  ;;  %v1100_v25 = vld [vmem:[#allocation6] sm:$0xff] }
 0x12e   :  { %v1329_v31 = vadd.f32 %v1328_v29, %v1327_v26  ;;  %v1330_v33 = vpop.f32.mrb[2].mxu1  ;;  %v1309_v34 = vpop.f32.mrb[3].mxu0  ;;  %v1101_v26 = vld [vmem:[#allocation6 + $0x8] sm:$0xff]  ;;  %v1103_v29 = vld [vmem:[#allocation6 + $0x18] sm:$0xff] }
 0x12f   :  { %v1331_v35 = vpop.f32.mrb[3].mxu1  ;;  %v528_v36 = vadd.f32 %v1307_v30, %v1237_v27  ;;  %v1102_v27 = vld [vmem:[#allocation6 + $0x10] sm:$0xff]  ;;  %v1796_v28 = vpack.c.bf16 %v1101_v26, %v1100_v25  ;;  %v1107_v34 = vld [vmem:[#allocation6 + $0x38] sm:$0xff] }
 0x130   :  { %v1799_v30 = vpack.c.bf16 %v1103_v29, %v1102_v27  ;;  %v1106_v33 = vld [vmem:[#allocation6 + $0x30] sm:$0xff] }
 0x131   :  { %v568_v37 = vadd.f32 %v1329_v31, %v528_v36  ;;  %v1105_v31 = vld [vmem:[#allocation6 + $0x28] sm:$0xff]  ;;  %v1805_v35 = vpack.c.bf16 %v1107_v34, %v1106_v33  ;;  %v1108_v36 = vld [vmem:[#allocation6 + $0x40] sm:$0xff] }
 0x134   :  { %v647_v38 = vpop.f32.mrb[4].mxu1 }
 0x135   :  { %v1463_v39 = vpop.f32.mrb[5].mxu1 }
 0x136   :  { %v650_v40 = vpop.f32.mrb[6].mxu1 }
 0x137   :  { %v1464_v42 = vpop.f32.mrb[7].mxu1 }
 0x14b   :  { %v1349_v43 = vpop.f32.mrb[4].mxu0 }
 0x14c   :  { %v1350_v44 = vpop.f32.mrb[5].mxu0 }
 0x14d   :  { %v1351_v45 = vadd.f32 %v1350_v44, %v1349_v43  ;;  %v1352_v47 = vpop.f32.mrb[6].mxu0 }
 0x14e   :  { %v1353_v48 = vpop.f32.mrb[7].mxu0 }
 0x14f   :  { %v608_v49 = vadd.f32 %v1351_v45, %v568_v37  ;;  %v1109_v37 = vld [vmem:[#allocation6 + $0x48] sm:$0xff] }
 0x151   :  { %v2159_v50 = vadd.f32 %v647_v38, %v608_v49  ;;  %v1808_v38 = vpack.c.bf16 %v1109_v37, %v1108_v36 }
 0x153   :  { %653 = vst [vmem:[%s2278_s7] sm:$0xff] %v2159_v50 }
 0x154   :  { %v736_v51 = vpop.f32.mrb[8].mxu1 }
 0x155   :  { %v740_v53 = vadd.f32 %v736_v51, %v2159_v50  ;;  %v1499_v54 = vpop.f32.mrb[9].mxu1 }
 0x157   :  { %1878 = vtanh.f32 %v740_v53 }
 0x161   :  { %v2166_v55 = vpop.eup %1878 }
 0x162   :  { %1533 = vmatmul.mubr.f32.vlgmr.msra.gmra.mrb[8].mxu0 %v2166_v55  ;;  %v2193_v0 = vmul.f32 %v2166_v55, %v2188_v59 }
 0x163   :  { %1749 = vmatpush3.bf16.msra.mxu0 %v2078_v52  ;;  %1602 = vmatprep.mubr.msk.f32.mxu0 %vm1970_vm0, %v1969_v41 }
 0x164   :  { %1750 = vmatprep.subr.bf16.mxu0 %v1971_v46  ;;  %v743_v1 = vrot.slane %v2193_v0, 4 }
 0x166   :  { %v744_v2 = vadd.f32 %v743_v1, %v2193_v0 }
 0x167   :  { %1752 = vmatpush3.bf16.msra.mxu0 %v2081_v57 }
 0x168   :  { %1753 = vmatprep.subr.bf16.mxu0 %v1971_v46  ;;  %v745_v5 = vrot.slane %v744_v2, 2 }
 0x16a   :  { %v746_v8 = vadd.f32 %v745_v5, %v744_v2  ;;  %v1114_v2 = vld [vmem:[#allocation6 + $0x70] sm:$0xff]  ;;  %v1115_v5 = vld [vmem:[#allocation6 + $0x78] sm:$0xff] }
 0x16b   :  { %1755 = vmatpush3.bf16.msra.mxu0 %v2087_v62 }
 0x16c   :  { %1756 = vmatprep.subr.bf16.mxu0 %v1971_v46  ;;  %v747_v12 = vrot.slane %v746_v8, 1 }
 0x16e   :  { %v748_v14 = vadd.f32 %v747_v12, %v746_v8  ;;  %v749_v12 = vmul.f32 %v2166_v55, %v2193_v0 }
 0x16f   :  { %1758 = vmatpush3.bf16.msra.mxu0 %v2091_v3 }
 0x170   :  { %1759 = vmatprep.subr.bf16.mxu0 %v1971_v46 }
 0x173   :  { %1761 = vmatpush3.bf16.msra.mxu0 %v2098_v10 }
 0x174   :  { %1762 = vmatprep.subr.bf16.mxu0 %v1971_v46 }
 0x177   :  { %1764 = vmatpush3.bf16.msra.mxu0 %v2102_v15 }
 0x178   :  { %1765 = vmatprep.subr.bf16.mxu0 %v1971_v46 }
 0x17b   :  { %1767 = vmatpush3.bf16.msra.mxu0 %v2109_v21 }
 0x17c   :  { %1768 = vmatprep.subr.bf16.mxu0 %v1971_v46 }
 0x17f   :  { %1770 = vmatpush3.bf16.msra.mxu0 %v2114_v24 }
 0x180   :  { %1795 = vmatprep.subr.bf16.mxu0 %v1971_v46 }
 0x235   :  { %v822_v60 = vpop.f32.mrb[8].mxu0 }
 0x236   :  { %v826_v61 = vadd.f32 %v822_v60, %v2159_v50  ;;  %v1534_v63 = vpop.f32.mrb[9].mxu0  ;;  %v1811_v60 = vpack.c.bf16 %v1111_v58, %v1110_v56 }
 0x237   :  { %v1113_v63 = vld [vmem:[#allocation6 + $0x68] sm:$0xff] }
 0x238   :  { %1880 = vtanh.f32 %v826_v61  ;;  %v1112_v61 = vld [vmem:[#allocation6 + $0x60] sm:$0xff] }
 0x239   :  { %v1814_v1 = vpack.c.bf16 %v1113_v63, %v1112_v61 }
 0x242   :  { %v2197_v4 = vpop.eup %1880 }
 0x243   :  { %v2201_v6 = vmul.f32 %v2197_v4, %v2188_v59  ;;  %1568 = vmatmul.mubr.f32.vlgmr.msra.gmra.mrb[10].mxu1 %v2197_v4 }
 0x244   :  { %1773 = vmatpush3.bf16.msra.mxu1 %v2078_v52  ;;  %1637 = vmatprep.mubr.msk.f32.mxu1 %vm1970_vm0, %v1969_v41 }
 0x245   :  { %v829_v7 = vrot.slane %v2201_v6, 4  ;;  %1774 = vmatprep.subr.bf16.mxu1 %v1971_v46 }
 0x247   :  { %v830_v9 = vadd.f32 %v829_v7, %v2201_v6  ;;  %v1817_v7 = vpack.c.bf16 %v1115_v5, %v1114_v2 }
 0x248   :  { %1776 = vmatpush3.bf16.msra.mxu1 %v2081_v57 }
 0x249   :  { %v831_v11 = vrot.slane %v830_v9, 2  ;;  %1777 = vmatprep.subr.bf16.mxu1 %v1971_v46 }
 0x24b   :  { %v832_v13 = vadd.f32 %v831_v11, %v830_v9 }
 0x24c   :  { %1779 = vmatpush3.bf16.msra.mxu1 %v2087_v62 }
 0x24d   :  { %v833_v52 = vrot.slane %v832_v13, 1  ;;  %1780 = vmatprep.subr.bf16.mxu1 %v1971_v46 }
 0x24f   :  { %v834_v16 = vadd.f32 %v833_v52, %v832_v13  ;;  %v835_v13 = vmul.f32 %v2197_v4, %v2201_v6 }
 0x250   :  { %1782 = vmatpush3.bf16.msra.mxu1 %v2091_v3 }
 0x251   :  { %1783 = vmatprep.subr.bf16.mxu1 %v1971_v46  ;;  %v1205_v17 = vsel %vm1204_vm3, %v748_v14, %v834_v16  ;;  %v836_v16 = vrot.slane %v835_v13, 4 }
 0x254   :  { %1785 = vmatpush3.bf16.msra.mxu1 %v2098_v10 }
 0x255   :  { %1786 = vmatprep.subr.bf16.mxu1 %v1971_v46 }
 0x258   :  { %1788 = vmatpush3.bf16.msra.mxu1 %v2102_v15 }
 0x259   :  { %1789 = vmatprep.subr.bf16.mxu1 %v1971_v46 }
 0x25c   :  { %1791 = vmatpush3.bf16.msra.mxu1 %v2109_v21 }
 0x25d   :  { %1792 = vmatprep.subr.bf16.mxu1 %v1971_v46 }
 0x260   :  { %1794 = vmatpush3.bf16.msra.mxu1 %v2114_v24 }
 0x316   :  { %v908_v57 = vpop.f32.mrb[10].mxu1 }
 0x317   :  { %v912_v62 = vadd.f32 %v908_v57, %v2159_v50  ;;  %v1569_v3 = vpop.f32.mrb[11].mxu1 }
 0x318   :  { %v837_v3 = vadd.f32 %v836_v16, %v835_v13 }
 0x319   :  { %1882 = vtanh.f32 %v912_v62 }
 0x31a   :  { %v838_v0 = vrot.slane %v837_v3, 2 }
 0x323   :  { %v2225_v18 = vpop.eup %1882 }
 0x324   :  { %v2229_v10 = vmul.f32 %v2225_v18, %v2188_v59  ;;  %1603 = vmatmul.mubr.f32.vlgmr.msra.gmra.mrb[10].mxu0 %v2225_v18 }
 0x325   :  { %1672 = vmatprep.mubr.msk.f32.mxu0 %vm1970_vm0, %v1969_v41  ;;  %1797 = vmatpush3.bf16.msra.mxu0 %v1796_v28  ;;  %v1104_v41 = vld [vmem:[#allocation6 + $0x20] sm:$0xff] }
 0x326   :  { %v915_v15 = vrot.slane %v2229_v10, 4  ;;  %1798 = vmatprep.subr.bf16.mxu0 %v1971_v46  ;;  %v1802_v32 = vpack.c.bf16 %v1105_v31, %v1104_v41  ;;  %v921_v14 = vmul.f32 %v2225_v18, %v2229_v10 }
 0x328   :  { %v916_v19 = vadd.f32 %v915_v15, %v2229_v10  ;;  %v922_v57 = vrot.slane %v921_v14, 4 }
 0x329   :  { %1800 = vmatpush3.bf16.msra.mxu0 %v1799_v30 }
 0x32a   :  { %v917_v20 = vrot.slane %v916_v19, 2  ;;  %1801 = vmatprep.subr.bf16.mxu0 %v1971_v46 }
 0x32c   :  { %v918_v21 = vadd.f32 %v917_v20, %v916_v19  ;;  %v923_v19 = vadd.f32 %v922_v57, %v921_v14 }
 0x32d   :  { %1803 = vmatpush3.bf16.msra.mxu0 %v1802_v32 }
 0x32e   :  { %v919_v22 = vrot.slane %v918_v21, 1  ;;  %1804 = vmatprep.subr.bf16.mxu0 %v1971_v46 }
 0x330   :  { %v920_v23 = vadd.f32 %v919_v22, %v918_v21  ;;  %v924_v22 = vrot.slane %v923_v19, 2 }
 0x331   :  { %1806 = vmatpush3.bf16.msra.mxu0 %v1805_v35 }
 0x332   :  { %v1207_v24 = vsel %vm1206_vm4, %v1205_v17, %v920_v23  ;;  %1807 = vmatprep.subr.bf16.mxu0 %v1971_v46  ;;  %v925_v28 = vadd.f32 %v924_v22, %v923_v19 }
 0x334   :  { %v926_v34 = vrot.slane %v925_v28, 1 }
 0x335   :  { %1809 = vmatpush3.bf16.msra.mxu0 %v1808_v38 }
 0x336   :  { %1810 = vmatprep.subr.bf16.mxu0 %v1971_v46 }
 0x339   :  { %1812 = vmatpush3.bf16.msra.mxu0 %v1811_v60 }
 0x33a   :  { %1813 = vmatprep.subr.bf16.mxu0 %v1971_v46 }
 0x33d   :  { %1815 = vmatpush3.bf16.msra.mxu0 %v1814_v1 }
 0x33e   :  { %1816 = vmatprep.subr.bf16.mxu0 %v1971_v46  ;;  %v750_v46 = vrot.slane %v749_v12, 4 }
 0x340   :  { %v751_v62 = vadd.f32 %v750_v46, %v749_v12 }
 0x341   :  { %1818 = vmatpush3.bf16.msra.mxu0 %v1817_v7 }
 0x342   :  { %v752_v55 = vrot.slane %v751_v62, 2 }
 0x344   :  { %v753_v10 = vadd.f32 %v752_v55, %v751_v62 }
 0x346   :  { %v754_v41 = vrot.slane %v753_v10, 1 }
 0x348   :  { %v755_v37 = vadd.f32 %v754_v41, %v753_v10 }
 0x3f7   :  { %v994_v39 = vpop.f32.mrb[10].mxu0 }
 0x3f8   :  { %v998_v40 = vadd.f32 %v994_v39, %v2159_v50  ;;  %v1604_v42 = vpop.f32.mrb[11].mxu0 }
 0x3fa   :  { %1884 = vtanh.f32 %v998_v40 }
 0x404   :  { %v1885_v43 = vpop.eup %1884 }
 0x405   :  { %v1000_v44 = vmul.f32 %v1885_v43, %v2188_v59  ;;  %1638 = vmatmul.mubr.f32.vlgmr.msra.gmra.mrb[12].mxu1 %v1885_v43 }
 0x407   :  { %v1001_v45 = vrot.slane %v1000_v44, 4  ;;  %v1007_v52 = vmul.f32 %v1885_v43, %v1000_v44  ;;  %v927_v43 = vadd.f32 %v926_v34, %v925_v28 }
 0x409   :  { %v1002_v47 = vadd.f32 %v1001_v45, %v1000_v44  ;;  %v1008_v17 = vrot.slane %v1007_v52, 4 }
 0x40b   :  { %v1003_v48 = vrot.slane %v1002_v47, 2  ;;  %v1009_v15 = vadd.f32 %v1008_v17, %v1007_v52 }
 0x40d   :  { %v1004_v49 = vadd.f32 %v1003_v48, %v1002_v47  ;;  %v1010_v4 = vrot.slane %v1009_v15, 2 }
 0x40f   :  { %v1005_v51 = vrot.slane %v1004_v49, 1  ;;  %v1011_v25 = vadd.f32 %v1010_v4, %v1009_v15 }
 0x411   :  { %v1006_v53 = vadd.f32 %v1005_v51, %v1004_v49  ;;  %v1288_v51 = vld [vmem:[%s2276_s5] ss:$0 sm:$0xff] }
 0x413   :  { %v2244_v54 = vsel %vm1208_vm5, %v1207_v24, %v1006_v53  ;;  %v839_v24 = vadd.f32 %v838_v0, %v837_v3 }
 0x415   :  { %v840_v31 = vrot.slane %v839_v24, 1 }
 0x417   :  { %v841_v38 = vadd.f32 %v840_v31, %v839_v24 }
 0x4d8   :  { %v1080_v8 = vpop.f32.mrb[12].mxu1 }
 0x4d9   :  { %v1084_v9 = vadd.f32 %v1080_v8, %v2159_v50  ;;  %v1639_v11 = vpop.f32.mrb[13].mxu1 }
 0x4db   :  { %1886 = vtanh.f32 %v1084_v9 }
 0x4e5   :  { %v1887_v50 = vpop.eup %1886 }
 0x4e6   :  { %v1086_v20 = vmul.f32 %v1887_v50, %v2188_v59  ;;  %1673 = vmatmul.mubr.f32.vlgmr.msra.gmra.mrb[12].mxu0 %v1887_v50  ;;  %v1012_v59 = vrot.slane %v1011_v25, 1 }
 0x4e8   :  { %v1087_v6 = vrot.slane %v1086_v20, 4  ;;  %v1093_v21 = vmul.f32 %v1887_v50, %v1086_v20  ;;  %v1013_v39 = vadd.f32 %v1012_v59, %v1011_v25 }
 0x4ea   :  { %v1088_v23 = vadd.f32 %v1087_v6, %v1086_v20  ;;  %v1094_v18 = vrot.slane %v1093_v21, 4 }
 0x4ec   :  { %v1089_v26 = vrot.slane %v1088_v23, 2  ;;  %v1095_v27 = vadd.f32 %v1094_v18, %v1093_v21 }
 0x4ee   :  { %v1090_v29 = vadd.f32 %v1089_v26, %v1088_v23  ;;  %v1096_v30 = vrot.slane %v1095_v27, 2 }
 0x4f0   :  { %v1091_v32 = vrot.slane %v1090_v29, 1  ;;  %v1097_v33 = vadd.f32 %v1096_v30, %v1095_v27 }
 0x4f2   :  { %v1092_v35 = vadd.f32 %v1091_v32, %v1090_v29  ;;  %v1098_v36 = vrot.slane %v1097_v33, 1 }
 0x4f4   :  { %v1099_v40 = vadd.f32 %v1098_v36, %v1097_v33  ;;  %v1211_v42 = vsel %vm1210_vm6, %v2244_v54, %v1092_v35 }
 0x4f5   :  { %v1213_v44 = vsel %vm1212_vm7, %v1211_v42, %v755_v37 }
 0x4f6   :  { %v1215_v45 = vsel %vm1214_vm8, %v1213_v44, %v841_v38  ;;  %v1218_v47 = vsel %vm1204_vm3, %v1013_v39, %v1099_v40 }
 0x4f7   :  { %v1217_v48 = vsel %vm1216_vm9, %v1215_v45, %v927_v43  ;;  %v1219_v49 = vsel %vm1206_vm4, %v1218_v47, 0.0 }
 0x4f8   :  { %1220 = vst [vmem:[%s2279_s8] sm:$0xff] %v1217_v48  ;;  %1221 = vst [vmem:[%s2279_s8 + $0x8] sm:$0xff] %v1219_v49 }
 0x5b9   :  { %v1189_v53 = vpop.f32.mrb[12].mxu0 }
 0x5ba   :  { %v1190_v54 = vadd.f32 %v1288_v51, %v1189_v53  ;;  %v1674_v56 = vpop.f32.mrb[13].mxu0 }
 0x5bc   :  { %1193 = vmax.xlane.f32.xlu0 %v1190_v54 }
 0x649   :  { %v1194_v58 = vpop.xlane.xlu0 %1193 }
 0x64a   :  { %v1195_v60 = vsub.f32 %v1190_v54, %v1194_v58 }
 0x64c   :  { %v1196_v61 = vmul.f32 1.442695, %v1195_v60 }
 0x64e   :  { %1888 = vpow2.f32 %v1196_v61 }
 0x658   :  { %v1889_v63 = vpop.eup %1888 }
 0x659   :  { %1198 = vadd.xlane.f32.xlu0 %v1889_v63 }
 0x6e6   :  { %v1199_v1 = vpop.xlane.xlu0 %1198 }
 0x6e7   :  { %1890 = vlog2.f32 %v1199_v1 }
 0x6f1   :  { %v1891_v2 = vpop.eup %1890 }
 0x6f2   :  { %v1201_v5 = vmul.f32 0.6931472, %v1891_v2 }
 0x6f4   :  { %v1202_v7 = vsub.f32 %v1195_v60, %v1201_v5 }
 0x6f6   :  { %1203 = vst [vmem:[%s2277_s6] sm:$0xff] %v1202_v7 }
 0x6f7   :  { %1234 = vsyncpa [#allocation3], 1 }
 0x6f8   :  { %1235 = vsyncpa [#allocation5], 1 }

</bundles_post_ra>
